<compile_context>
chip_gen: v5e
topology: v5e:2x2
jax: 0.10.0
libtpu: 0.0.40
codegen_flags: <defaults>
</compile_context>

<pallas_src>
import functools

import jax
import jax.numpy as jnp
import numpy as np
from jax.experimental import pallas as pl
from jax.experimental.pallas import tpu as pltpu


def _bottleneck_kernel(BT, H, W, Cin, C,
                       x_ref, w1_ref, w2_ref, w3_ref,
                       b1_ref, b2_ref, b3_ref,
                       o_ref):
    M = BT * H * W

    # ---- conv1 (1x1, BN1 scale folded into w1) + bias + relu ----
    xb = x_ref[...].astype(jnp.bfloat16).reshape(M, Cin)
    h1 = jnp.dot(xb, w1_ref[...], preferred_element_type=jnp.float32)        # (M, C) f32
    h1b = jnp.maximum(h1 + b1_ref[...], 0.0).astype(jnp.bfloat16)
    h1b = h1b.reshape(BT, H, W, C)

    # ---- conv2 (3x3, stride=1, pad=1, BN2 scale folded) via lane-dense im2col ----
    # col_t(i, j) = h1(i + dy - 1, j + dx - 1), t = dy*3 + dx, zero-padded at the edges.
    # W shifts (sublane axis) are built once and reused; H shifts are cheap leading-axis
    # concatenations.  One (M, 9C) x (9C, C) bf16 matmul performs the whole 3x3 conv.
    zcol = jnp.zeros((BT, H, 1, C), jnp.bfloat16)
    zrow = jnp.zeros((BT, 1, W, C), jnp.bfloat16)
    w_shift = (
        jnp.concatenate([zcol, h1b[:, :, :W - 1, :]], axis=2),   # dx=0 -> h1[:, j-1]
        h1b,                                                     # dx=1 -> h1[:, j]
        jnp.concatenate([h1b[:, :, 1:, :], zcol], axis=2),       # dx=2 -> h1[:, j+1]
    )
    cols = []
    for dy in range(3):
        for dx in range(3):
            s = w_shift[dx]
            if dy == 0:                                          # h1[i-1, :]
                s = jnp.concatenate([zrow, s[:, :H - 1]], axis=1)
            elif dy == 2:                                        # h1[i+1, :]
                s = jnp.concatenate([s[:, 1:], zrow], axis=1)
            cols.append(s)
    x2 = jnp.concatenate(cols, axis=-1).reshape(M, 9 * C)        # (M, 9C) bf16

    h2 = jnp.dot(x2, w2_ref[...], preferred_element_type=jnp.float32)        # (M, C)
    h2 = jnp.maximum(h2 + b2_ref[...], 0.0)

    # ---- conv3 (1x1, expansion 4, BN3 scale folded) + bias ----
    h3 = jnp.dot(h2.astype(jnp.bfloat16), w3_ref[...],
                 preferred_element_type=jnp.float32)                         # (M, 4C)
    h3 = h3 + b3_ref[...]

    # ---- residual add (stride=1, downsample=None => residual = x) + relu ----
    # Re-read x_ref at the point of use: no f32 copy of x stays live across the matmuls
    # and the im2col build (shorter live ranges -> fewer spills, lower peak VMEM).
    res = x_ref[...].astype(jnp.float32).reshape(M, Cin)
    out = jnp.maximum(h3 + res, 0.0)
    o_ref[...] = out.reshape(BT, H, W, Cin).astype(o_ref.dtype)


def _pick_batch_tile(n, hw, cin, target_rows=512, max_bytes=4 << 20):
    """Largest divisor of n giving >= target matmul rows without an oversized x block."""
    bt = 1
    for d in range(2, n + 1):
        if n % d:
            continue
        if d * hw * cin * 4 > max_bytes:
            break
        bt = d
        if d * hw >= target_rows:
            break
    return bt


def _vmem_limit_bytes():
    # Per-generation scoped-VMEM budget: physical capacity minus ~25% headroom
    # (~48 MiB on v7x, ~96 MiB on v5e/v6e).  Fall back to the compiler default.
    try:
        return int(pltpu.get_tpu_info().vmem_capacity_bytes * 3 // 4)
    except Exception:
        return None


def bottleneck_forward(x, params, *, batch_tile=None):
    """x: (N, H, W, Cin) NHWC, Cin == 4 * out_channels (stride=1, downsample=None)."""
    N, H, W, Cin = x.shape
    w1, w2, w3 = params["w1"], params["w2"], params["w3"]
    C = w1.shape[1]
    assert Cin == 4 * C, "residual add requires in_channels == 4 * out_channels"
    # TODO(synk): stride>1 / downsample branch of the module is not implemented
    #             (defaults of the reference module: stride=1, downsample=None).
    # TODO(synk): optionally accept/emit bf16 activations at the pallas_call boundary
    #             to halve HBM traffic; f32 I/O is kept here to match the module.

    BT = batch_tile if batch_tile is not None else _pick_batch_tile(N, H * W, Cin)
    assert N % BT == 0

    # Fold BN scale into the conv weights (free at trace time); keep bias separate.
    s1, b1 = params["s1"], params["b1"]
    s2, b2 = params["s2"], params["b2"]
    s3, b3 = params["s3"], params["b3"]

    w1f = (w1 * s1[None, :]).astype(jnp.bfloat16)                            # (Cin, C)
    w2s = w2 * s2[None, None, None, :]                                       # (3,3,C,C)
    # (kh, kw, Cin, Cout) -> (9*Cin, Cout): row block t = dy*3 + dx (im2col layout).
    w2wide = w2s.reshape(9 * C, C).astype(jnp.bfloat16)
    w3f = (w3 * s3[None, :]).astype(jnp.bfloat16)                            # (C, 4C)

    b1r = b1.reshape(1, C).astype(jnp.float32)
    b2r = b2.reshape(1, C).astype(jnp.float32)
    b3r = b3.reshape(1, 4 * C).astype(jnp.float32)

    kernel = functools.partial(_bottleneck_kernel, BT, H, W, Cin, C)

    def const_spec(a):
        # Constant across the grid -> single-buffered (don't double the resident weights).
        return pl.BlockSpec(a.shape, lambda n: (0,) * a.ndim,
                            pipeline_mode=pl.Buffered(1))

    # TODO(synk): for activations even larger than ResNet's 56x56x256 stage, add a second
    #             grid axis tiling H with a 1-row halo.  With the lane-dense im2col conv2
    #             (no (HW,9C) f32 intermediate) and no long-lived f32 residual copy, the
    #             worst-case standard stage peaks around ~20 MiB/step and fits the default
    #             scoped VMEM on v5e/v6e/v7x, so one image (or BT images) per step is kept.
    return pl.pallas_call(
        kernel,
        out_shape=jax.ShapeDtypeStruct((N, H, W, Cin), x.dtype),
        grid_spec=pltpu.PrefetchScalarGridSpec(
            num_scalar_prefetch=0,
            grid=(N // BT,),
            in_specs=[
                pl.BlockSpec((BT, H, W, Cin), lambda n: (n, 0, 0, 0)),       # x
                const_spec(w1f),                                             # (Cin, C)
                const_spec(w2wide),                                          # (9C, C)
                const_spec(w3f),                                             # (C, 4C)
                const_spec(b1r), const_spec(b2r), const_spec(b3r),
            ],
            out_specs=pl.BlockSpec((BT, H, W, Cin), lambda n: (n, 0, 0, 0)),
        ),
        compiler_params=pltpu.CompilerParams(
            dimension_semantics=("parallel",),      # batch axis shards across TCs (v7x)
            vmem_limit_bytes=_vmem_limit_bytes(),
        ),
    )(x, w1f, w2wide, w3f, b1r, b2r, b3r)


def _fold_bn(gamma, beta, mean, var, eps=1e-5):
    scale = gamma / jnp.sqrt(var + eps)
    bias = beta - mean * scale
    return scale.astype(jnp.float32), bias.astype(jnp.float32)


def make_params(key, in_channels, out_channels):
    C = out_channels
    ks = jax.random.split(key, 12)
    w1 = jax.random.normal(ks[0], (in_channels, C), jnp.float32) * 0.1
    w2 = jax.random.normal(ks[1], (3, 3, C, C), jnp.float32) * 0.1
    w3 = jax.random.normal(ks[2], (C, 4 * C), jnp.float32) * 0.1

    def bn(kg, kb, km, kv, ch):
        gamma = jax.random.uniform(kg, (ch,), jnp.float32, 0.5, 1.5)
        beta = jax.random.normal(kb, (ch,), jnp.float32) * 0.1
        mean = jax.random.normal(km, (ch,), jnp.float32) * 0.1
        var = jax.random.uniform(kv, (ch,), jnp.float32, 0.5, 1.5)
        return _fold_bn(gamma, beta, mean, var)

    s1, b1 = bn(ks[3], ks[4], ks[5], ks[6], C)
    s2, b2 = bn(ks[7], ks[8], ks[9], ks[10], C)
    k2 = jax.random.split(ks[11], 4)
    s3, b3 = bn(k2[0], k2[1], k2[2], k2[3], 4 * C)
    return dict(w1=w1, w2=w2, w3=w3, s1=s1, b1=b1, s2=s2, b2=b2, s3=s3, b3=b3)


def reference_forward(x, p):
    """Pure-JAX NHWC f32 reference (BN folded), for correctness check."""
    def conv(x, w, pad):
        return jax.lax.conv_general_dilated(
            x, w, (1, 1), [(pad, pad), (pad, pad)],
            dimension_numbers=("NHWC", "HWIO", "NHWC"))
    Cin, C = p["w1"].shape
    h = conv(x, p["w1"].reshape(1, 1, Cin, C), 0)
    h = jnp.maximum(h * p["s1"] + p["b1"], 0.0)
    h = conv(h, p["w2"], 1)
    h = jnp.maximum(h * p["s2"] + p["b2"], 0.0)
    h = conv(h, p["w3"].reshape(1, 1, C, 4 * C), 0)
    h = h * p["s3"] + p["b3"]
    return jnp.maximum(h + x, 0.0)


if __name__ == "__main__":
    key = jax.random.PRNGKey(0)

    def run_case(k, N, H, W, out_channels, batch_tile=None):
        in_channels = 4 * out_channels          # expansion * out_channels (stride=1)
        kx, kp = jax.random.split(k)
        x = jax.random.normal(kx, (N, H, W, in_channels), jnp.float32)
        params = make_params(kp, in_channels, out_channels)
        out = jax.block_until_ready(bottleneck_forward(x, params, batch_tile=batch_tile))
        ref = jax.block_until_ready(reference_forward(x, params))
        # bf16 MXU inputs (f32 accumulation) => looser tolerance than a pure-f32 kernel.
        np.testing.assert_allclose(np.asarray(out), np.asarray(ref), rtol=5e-2, atol=5e-2)

    k1, k2 = jax.random.split(key)
    run_case(k1, N=2, H=8, W=8, out_channels=4)                   # BT=2, grid=(1,)
    run_case(k2, N=3, H=16, W=16, out_channels=8, batch_tile=1)   # BT=1, grid=(3,)

    print("KERNEL_OK")
</pallas_src>

<mosaic_0001>
module attributes {stable_mosaic.version = 11 : i64} {
  func.func @_bottleneck_kernel(%arg0: i32, %arg1: memref<2x8x8x16xf32, #tpu.memory_space<vmem>>, %arg2: memref<16x4xbf16, #tpu.memory_space<vmem>>, %arg3: memref<36x4xbf16, #tpu.memory_space<vmem>>, %arg4: memref<4x16xbf16, #tpu.memory_space<vmem>>, %arg5: memref<1x4xf32, #tpu.memory_space<vmem>>, %arg6: memref<1x4xf32, #tpu.memory_space<vmem>>, %arg7: memref<1x16xf32, #tpu.memory_space<vmem>>, %arg8: memref<2x8x8x16xf32, #tpu.memory_space<vmem>>) attributes {dimension_semantics = [#tpu.dimension_semantics<parallel>], iteration_bounds = array<i64: 1>, scalar_prefetch = 0 : i64, scratch_operands = 0 : i64, tpu.core_type = #tpu.core_type<tc>, window_params = [{transform_indices = @transform_0, window_bounds = array<i64: 2, 8, 8, 16>}, {pipeline_mode = #tpu.pipeline_mode<synchronous>, transform_indices = @transform_1, window_bounds = array<i64: 16, 4>}, {pipeline_mode = #tpu.pipeline_mode<synchronous>, transform_indices = @transform_2, window_bounds = array<i64: 36, 4>}, {pipeline_mode = #tpu.pipeline_mode<synchronous>, transform_indices = @transform_3, window_bounds = array<i64: 4, 16>}, {pipeline_mode = #tpu.pipeline_mode<synchronous>, transform_indices = @transform_4, window_bounds = array<i64: 1, 4>}, {pipeline_mode = #tpu.pipeline_mode<synchronous>, transform_indices = @transform_5, window_bounds = array<i64: 1, 4>}, {pipeline_mode = #tpu.pipeline_mode<synchronous>, transform_indices = @transform_6, window_bounds = array<i64: 1, 16>}, {transform_indices = @transform_7, window_bounds = array<i64: 2, 8, 8, 16>}]} {
    %c0 = arith.constant 0 : index
    %c0_0 = arith.constant 0 : index
    %c0_1 = arith.constant 0 : index
    %c0_2 = arith.constant 0 : index
    %0 = vector.load %arg1[%c0, %c0_0, %c0_1, %c0_2] : memref<2x8x8x16xf32, #tpu.memory_space<vmem>>, vector<2x8x8x16xf32>
    %1 = arith.truncf %0 : vector<2x8x8x16xf32> to vector<2x8x8x16xbf16>
    %2 = vector.shape_cast %1 : vector<2x8x8x16xbf16> to vector<128x16xbf16>
    %c0_3 = arith.constant 0 : index
    %c0_4 = arith.constant 0 : index
    %3 = vector.load %arg2[%c0_3, %c0_4] : memref<16x4xbf16, #tpu.memory_space<vmem>>, vector<16x4xbf16>
    %cst = arith.constant dense<0.000000e+00> : vector<128x4xf32>
    %4 = tpu.matmul %2, %3, %cst {dimension_numbers = #tpu.dot_dimension_numbers<[1], [0], [0], [1], [0, 0, 1, 1], [], []>} : vector<128x16xbf16>, vector<16x4xbf16>, vector<128x4xf32> -> vector<128x4xf32>
    %c0_5 = arith.constant 0 : index
    %c0_6 = arith.constant 0 : index
    %5 = vector.load %arg5[%c0_5, %c0_6] : memref<1x4xf32, #tpu.memory_space<vmem>>, vector<1x4xf32>
    %6 = vector.broadcast %5 : vector<1x4xf32> to vector<128x4xf32>
    %7 = arith.addf %4, %6 : vector<128x4xf32>
    %cst_7 = arith.constant 0.000000e+00 : f32
    %8 = vector.broadcast %cst_7 : f32 to vector<128x4xf32>
    %9 = arith.maximumf %7, %8 : vector<128x4xf32>
    %10 = arith.truncf %9 : vector<128x4xf32> to vector<128x4xbf16>
    %11 = vector.shape_cast %10 : vector<128x4xbf16> to vector<2x8x8x4xbf16>
    %cst_8 = arith.constant 0.000000e+00 : bf16
    %12 = vector.broadcast %cst_8 : bf16 to vector<2x8x1x4xbf16>
    %cst_9 = arith.constant 0.000000e+00 : bf16
    %13 = vector.broadcast %cst_9 : bf16 to vector<2x1x8x4xbf16>
    %14 = vector.extract_strided_slice %11 {offsets = [0, 0, 0, 0], sizes = [2, 8, 7, 4], strides = [1, 1, 1, 1]} : vector<2x8x8x4xbf16> to vector<2x8x7x4xbf16>
    %15 = tpu.concatenate %12, %14 in 2 : vector<2x8x1x4xbf16>, vector<2x8x7x4xbf16> -> vector<2x8x8x4xbf16>
    %16 = vector.extract_strided_slice %11 {offsets = [0, 0, 1, 0], sizes = [2, 8, 7, 4], strides = [1, 1, 1, 1]} : vector<2x8x8x4xbf16> to vector<2x8x7x4xbf16>
    %17 = tpu.concatenate %16, %12 in 2 : vector<2x8x7x4xbf16>, vector<2x8x1x4xbf16> -> vector<2x8x8x4xbf16>
    %18 = vector.extract_strided_slice %15 {offsets = [0, 0, 0, 0], sizes = [2, 7, 8, 4], strides = [1, 1, 1, 1]} : vector<2x8x8x4xbf16> to vector<2x7x8x4xbf16>
    %19 = tpu.concatenate %13, %18 in 1 : vector<2x1x8x4xbf16>, vector<2x7x8x4xbf16> -> vector<2x8x8x4xbf16>
    %20 = vector.extract_strided_slice %11 {offsets = [0, 0, 0, 0], sizes = [2, 7, 8, 4], strides = [1, 1, 1, 1]} : vector<2x8x8x4xbf16> to vector<2x7x8x4xbf16>
    %21 = tpu.concatenate %13, %20 in 1 : vector<2x1x8x4xbf16>, vector<2x7x8x4xbf16> -> vector<2x8x8x4xbf16>
    %22 = vector.extract_strided_slice %17 {offsets = [0, 0, 0, 0], sizes = [2, 7, 8, 4], strides = [1, 1, 1, 1]} : vector<2x8x8x4xbf16> to vector<2x7x8x4xbf16>
    %23 = tpu.concatenate %13, %22 in 1 : vector<2x1x8x4xbf16>, vector<2x7x8x4xbf16> -> vector<2x8x8x4xbf16>
    %24 = vector.extract_strided_slice %15 {offsets = [0, 1, 0, 0], sizes = [2, 7, 8, 4], strides = [1, 1, 1, 1]} : vector<2x8x8x4xbf16> to vector<2x7x8x4xbf16>
    %25 = tpu.concatenate %24, %13 in 1 : vector<2x7x8x4xbf16>, vector<2x1x8x4xbf16> -> vector<2x8x8x4xbf16>
    %26 = vector.extract_strided_slice %11 {offsets = [0, 1, 0, 0], sizes = [2, 7, 8, 4], strides = [1, 1, 1, 1]} : vector<2x8x8x4xbf16> to vector<2x7x8x4xbf16>
    %27 = tpu.concatenate %26, %13 in 1 : vector<2x7x8x4xbf16>, vector<2x1x8x4xbf16> -> vector<2x8x8x4xbf16>
    %28 = vector.extract_strided_slice %17 {offsets = [0, 1, 0, 0], sizes = [2, 7, 8, 4], strides = [1, 1, 1, 1]} : vector<2x8x8x4xbf16> to vector<2x7x8x4xbf16>
    %29 = tpu.concatenate %28, %13 in 1 : vector<2x7x8x4xbf16>, vector<2x1x8x4xbf16> -> vector<2x8x8x4xbf16>
    %30 = tpu.concatenate %19, %21, %23, %15, %11, %17, %25, %27, %29 in 3 : vector<2x8x8x4xbf16>, vector<2x8x8x4xbf16>, vector<2x8x8x4xbf16>, vector<2x8x8x4xbf16>, vector<2x8x8x4xbf16>, vector<2x8x8x4xbf16>, vector<2x8x8x4xbf16>, vector<2x8x8x4xbf16>, vector<2x8x8x4xbf16> -> vector<2x8x8x36xbf16>
    %31 = vector.shape_cast %30 : vector<2x8x8x36xbf16> to vector<128x36xbf16>
    %c0_10 = arith.constant 0 : index
    %c0_11 = arith.constant 0 : index
    %32 = vector.load %arg3[%c0_10, %c0_11] : memref<36x4xbf16, #tpu.memory_space<vmem>>, vector<36x4xbf16>
    %cst_12 = arith.constant dense<0.000000e+00> : vector<128x4xf32>
    %33 = tpu.matmul %31, %32, %cst_12 {dimension_numbers = #tpu.dot_dimension_numbers<[1], [0], [0], [1], [0, 0, 1, 1], [], []>} : vector<128x36xbf16>, vector<36x4xbf16>, vector<128x4xf32> -> vector<128x4xf32>
    %c0_13 = arith.constant 0 : index
    %c0_14 = arith.constant 0 : index
    %34 = vector.load %arg6[%c0_13, %c0_14] : memref<1x4xf32, #tpu.memory_space<vmem>>, vector<1x4xf32>
    %35 = vector.broadcast %34 : vector<1x4xf32> to vector<128x4xf32>
    %36 = arith.addf %33, %35 : vector<128x4xf32>
    %cst_15 = arith.constant 0.000000e+00 : f32
    %37 = vector.broadcast %cst_15 : f32 to vector<128x4xf32>
    %38 = arith.maximumf %36, %37 : vector<128x4xf32>
    %39 = arith.truncf %38 : vector<128x4xf32> to vector<128x4xbf16>
    %c0_16 = arith.constant 0 : index
    %c0_17 = arith.constant 0 : index
    %40 = vector.load %arg4[%c0_16, %c0_17] : memref<4x16xbf16, #tpu.memory_space<vmem>>, vector<4x16xbf16>
    %cst_18 = arith.constant dense<0.000000e+00> : vector<128x16xf32>
    %41 = tpu.matmul %39, %40, %cst_18 {dimension_numbers = #tpu.dot_dimension_numbers<[1], [0], [0], [1], [0, 0, 1, 1], [], []>} : vector<128x4xbf16>, vector<4x16xbf16>, vector<128x16xf32> -> vector<128x16xf32>
    %c0_19 = arith.constant 0 : index
    %c0_20 = arith.constant 0 : index
    %42 = vector.load %arg7[%c0_19, %c0_20] : memref<1x16xf32, #tpu.memory_space<vmem>>, vector<1x16xf32>
    %43 = vector.broadcast %42 : vector<1x16xf32> to vector<128x16xf32>
    %44 = arith.addf %41, %43 : vector<128x16xf32>
    %c0_21 = arith.constant 0 : index
    %c0_22 = arith.constant 0 : index
    %c0_23 = arith.constant 0 : index
    %c0_24 = arith.constant 0 : index
    %45 = vector.load %arg1[%c0_21, %c0_22, %c0_23, %c0_24] : memref<2x8x8x16xf32, #tpu.memory_space<vmem>>, vector<2x8x8x16xf32>
    %46 = vector.shape_cast %45 : vector<2x8x8x16xf32> to vector<128x16xf32>
    %47 = arith.addf %44, %46 : vector<128x16xf32>
    %cst_25 = arith.constant 0.000000e+00 : f32
    %48 = vector.broadcast %cst_25 : f32 to vector<128x16xf32>
    %49 = arith.maximumf %47, %48 : vector<128x16xf32>
    %50 = vector.shape_cast %49 : vector<128x16xf32> to vector<2x8x8x16xf32>
    %c0_26 = arith.constant 0 : index
    %c0_27 = arith.constant 0 : index
    %c0_28 = arith.constant 0 : index
    %c0_29 = arith.constant 0 : index
    %51 = vector.load %arg8[%c0_26, %c0_27, %c0_28, %c0_29] : memref<2x8x8x16xf32, #tpu.memory_space<vmem>>, vector<2x8x8x16xf32>
    tpu.vector_store %arg8[%c0_26, %c0_27, %c0_28, %c0_29], %50 {strides = array<i32>} : memref<2x8x8x16xf32, #tpu.memory_space<vmem>>, vector<2x8x8x16xf32>,
    return
  }
  func.func @transform_0(%arg0: i32) -> (i32, i32, i32, i32) {
    %c0_i32 = arith.constant 0 : i32
    %c0_i32_0 = arith.constant 0 : i32
    %c0_i32_1 = arith.constant 0 : i32
    %c0_i32_2 = arith.constant 0 : i32
    return %arg0, %c0_i32, %c0_i32_0, %c0_i32_1 : i32, i32, i32, i32
  }
  func.func @transform_1(%arg0: i32) -> (i32, i32) {
    %c0_i32 = arith.constant 0 : i32
    %c0_i32_0 = arith.constant 0 : i32
    %c0_i32_1 = arith.constant 0 : i32
    return %c0_i32, %c0_i32_0 : i32, i32
  }
  func.func @transform_2(%arg0: i32) -> (i32, i32) {
    %c0_i32 = arith.constant 0 : i32
    %c0_i32_0 = arith.constant 0 : i32
    %c0_i32_1 = arith.constant 0 : i32
    return %c0_i32, %c0_i32_0 : i32, i32
  }
  func.func @transform_3(%arg0: i32) -> (i32, i32) {
    %c0_i32 = arith.constant 0 : i32
    %c0_i32_0 = arith.constant 0 : i32
    %c0_i32_1 = arith.constant 0 : i32
    return %c0_i32, %c0_i32_0 : i32, i32
  }
  func.func @transform_4(%arg0: i32) -> (i32, i32) {
    %c0_i32 = arith.constant 0 : i32
    %c0_i32_0 = arith.constant 0 : i32
    %c0_i32_1 = arith.constant 0 : i32
    return %c0_i32, %c0_i32_0 : i32, i32
  }
  func.func @transform_5(%arg0: i32) -> (i32, i32) {
    %c0_i32 = arith.constant 0 : i32
    %c0_i32_0 = arith.constant 0 : i32
    %c0_i32_1 = arith.constant 0 : i32
    return %c0_i32, %c0_i32_0 : i32, i32
  }
  func.func @transform_6(%arg0: i32) -> (i32, i32) {
    %c0_i32 = arith.constant 0 : i32
    %c0_i32_0 = arith.constant 0 : i32
    %c0_i32_1 = arith.constant 0 : i32
    return %c0_i32, %c0_i32_0 : i32, i32
  }
  func.func @transform_7(%arg0: i32) -> (i32, i32, i32, i32) {
    %c0_i32 = arith.constant 0 : i32
    %c0_i32_0 = arith.constant 0 : i32
    %c0_i32_1 = arith.constant 0 : i32
    %c0_i32_2 = arith.constant 0 : i32
    return %arg0, %c0_i32, %c0_i32_0, %c0_i32_1 : i32, i32, i32, i32
  }
}

</mosaic_0001>

<bundles_post_ra>
// kernel: tpu_custom_call.1
= control target key start
LH: loop header
LB: loop body
LE: loop exit
PB: predicated region body
PF: predicated region fallthrough
CT: control target
= control target key end

     0   :  { %12 = vsyncpa [#allocation3], 0  ;;  %s2228_s0 = inlined_call_operand.hbm [shape: f32[2,8,8,16], index: 0, kind: input, shape index: {}]   ;;  %s2229_s1 = inlined_call_operand.vmem [shape: bf16[16,4], index: 1, kind: input, shape index: {}]   ;;  %s2230_s2 = inlined_call_operand.vmem [shape: bf16[36,4], index: 2, kind: input, shape index: {}]   ;;  %s2231_s3 = inlined_call_operand.vmem [shape: bf16[4,16], index: 3, kind: input, shape index: {}]   ;;  %s2232_s4 = inlined_call_operand.vmem [shape: f32[1,4], index: 4, kind: input, shape index: {}]   ;;  %s2233_s5 = inlined_call_operand.vmem [shape: f32[1,4], index: 5, kind: input, shape index: {}]   ;;  %s2234_s6 = inlined_call_operand.vmem [shape: f32[1,16], index: 6, kind: input, shape index: {}]   ;;  %s2235_s7 = inlined_call_operand.hbm [shape: f32[2,8,8,16], index: 7, kind: output, shape index: {}]  }
   0x1   :  { %13 = vsyncpa [#allocation4], 0  ;;  %s18_s26 = sshll.u32 %s2228_s0, 4  ;;  %s1489_s27 = smov [#allocation2]   ;;  %s19_s26 = int_to_ptr.hbm [resolvable:$true] %s18_s26 }
   0x2   :  { %s20_s28 = sshll.u32 %s1489_s27, 4  ;;  %s1490_s29 = smov 128   ;;  %s21_s28 = int_to_ptr.vmem [resolvable:$true] %s20_s28 }
   0x3   :  { %s1491_s30 = smov 8  }
   0x4   :  { %26 = dma.hbm_to_vmem [thread:$0]  %s19_s26, 2048, %s21_s28, [#allocation3], %s1490_s29, %s1490_s29, %s1491_s30  }
   0x5   :  { %1485 = dma.done.wait [#allocation3], 2048  }
   0x6   :  { %1486 = vsyncadd [#allocation3], 4294965248  ;;  %v1398_v0 = vld [vmem:[%s2229_s1] sm:$0xff]  ;;  %v45_v2 = vld [vmem:[#allocation2 + $0x8] sm:$0xff]  ;;  %vm128_vm0 = vcmask 130048   ;;  %v1492_v24 = vmov 0  }
   0x7   :  { %v44_v1 = vld [vmem:[#allocation2] sm:$0xff]  ;;  %v61_v4 = vpack.c.bf16 %v45_v2, %v45_v2  ;;  %v58_v5 = vld [vmem:[#allocation2 + $0x70] sm:$0xff]  ;;  %v59_v6 = vld [vmem:[#allocation2 + $0x78] sm:$0xff]  ;;  %160 = vmatpush.bf16.msra.mxu0 %v1398_v0  ;;  %1401 = vmatpush.bf16.msra.mxu3 %v1398_v0  ;;  %s1493_s0 = smov 4   ;;  %s1494_s1 = smov 24   ;;  %v715_v37 = vunpack.c.l.b16 %v1492_v24  ;;  %vm410_vm1 = vcmask 1040384  }
   0x8   :  { %v60_v3 = vpack.c.bf16 %v44_v1, %v44_v1  ;;  %v74_v7 = vpack.c.bf16 %v58_v5, %v58_v5  ;;  %v75_v8 = vpack.c.bf16 %v59_v6, %v59_v6  ;;  %v46_v15 = vld [vmem:[#allocation2 + $0x10] sm:$0xff]  ;;  %v47_v16 = vld [vmem:[#allocation2 + $0x18] sm:$0xff]  ;;  %v48_v22 = vld [vmem:[#allocation2 + $0x20] sm:$0xff]  ;;  %497 = vrot.lane.b32.xlu0 %v1492_v24, %s1493_s0  ;;  %541 = vrot.lane.b32.xlu1 %v1492_v24, %s1491_s30  ;;  %s1495_s10 = smov 32   ;;  %s1496_s11 = smov 28   ;;  %vm477_vm4 = vcmask 1043456  }
   0x9   :  { %v99_v10 = vunpack.c.l.b16 %v61_v4  ;;  %v62_v17 = vpack.c.bf16 %v46_v15, %v46_v15  ;;  %v63_v18 = vpack.c.bf16 %v47_v16, %v47_v16  ;;  %v49_v23 = vld [vmem:[#allocation2 + $0x28] sm:$0xff]  ;;  %699 = vrot.lane.b32.xlu2 %v1492_v24, %s1494_s1  ;;  %v64_v25 = vpack.c.bf16 %v48_v22, %v48_v22  ;;  %v50_v30 = vld [vmem:[#allocation2 + $0x30] sm:$0xff]  ;;  %v51_v31 = vld [vmem:[#allocation2 + $0x38] sm:$0xff]  ;;  %s1498_s14 = smov 12   ;;  %s1499_s15 = smov 20  }
   0xa   :  { %v98_v9 = vunpack.c.l.b16 %v60_v3  ;;  %v112_v11 = vunpack.c.l.b16 %v74_v7  ;;  %v113_v12 = vunpack.c.l.b16 %v75_v8  ;;  %v65_v26 = vpack.c.bf16 %v49_v23, %v49_v23  ;;  %v52_v39 = vld [vmem:[#allocation2 + $0x40] sm:$0xff]  ;;  %v53_v40 = vld [vmem:[#allocation2 + $0x48] sm:$0xff]  ;;  %v54_v58 = vld [vmem:[#allocation2 + $0x50] sm:$0xff]  ;;  %s1349_s28 = sshll.u32 %s2235_s7, 4  ;;  %s1350_s28 = int_to_ptr.hbm [resolvable:$true] %s1349_s28 }
   0xb   :  { %v100_v19 = vunpack.c.l.b16 %v62_v17  ;;  %v101_v20 = vunpack.c.l.b16 %v63_v18  ;;  %v102_v27 = vunpack.c.l.b16 %v64_v25  ;;  %v66_v32 = vpack.c.bf16 %v50_v30, %v50_v30  ;;  %v1564_v46 = vld [vmem:[%s2232_s4] ss:$0 sm:$0xff]  ;;  %v55_v59 = vld [vmem:[#allocation2 + $0x58] sm:$0xff]  ;;  %s1497_s4 = smov 16  }
   0xc   :  { %v114_v13 = vpack.c.b16 %v99_v10, %v98_v9  ;;  %v121_v14 = vpack.c.b16 %v113_v12, %v112_v11  ;;  %v103_v28 = vunpack.c.l.b16 %v65_v26  ;;  %v67_v33 = vpack.c.bf16 %v51_v31, %v51_v31 }
   0xd   :  { %v115_v21 = vpack.c.b16 %v101_v20, %v100_v19  ;;  %v104_v34 = vunpack.c.l.b16 %v66_v32  ;;  %v716_v38 = vpack.c.b16 %v715_v37, %v715_v37  ;;  %v68_v41 = vpack.c.bf16 %v52_v39, %v52_v39 }
   0xe   :  { %1366 = vmatmul.msk.bf16.vlgmr.msra.gmra.mxu0 %vm128_vm0, %v114_v13  ;;  %1373 = vmatmul.msk.bf16.vlgmr.msra.gmra.mxu3 %vm128_vm0, %v121_v14  ;;  %v116_v29 = vpack.c.b16 %v103_v28, %v102_v27  ;;  %v105_v35 = vunpack.c.l.b16 %v67_v33  ;;  %v69_v42 = vpack.c.bf16 %v53_v40, %v53_v40  ;;  %vm411_vm2 = vsmask.f32 256 }
   0xf   :  { %v106_v43 = vunpack.c.l.b16 %v68_v41  ;;  %v70_v63 = vpack.c.bf16 %v54_v58, %v54_v58  ;;  %v71_v1 = vpack.c.bf16 %v55_v59, %v55_v59  ;;  %vm1572_vm3 = vmand %vm410_vm1, %vm411_vm2  ;;  %vm478_vm5 = vsmask.f32 3328 }
  0x10   :  { %761 = vrot.lane.b32.xlu0 %v1492_v24, %s1495_s10  ;;  %v117_v36 = vpack.c.b16 %v105_v35, %v104_v34  ;;  %731 = vrot.lane.b32.xlu1 %v716_v38, %s1496_s11  ;;  %v107_v44 = vunpack.c.l.b16 %v69_v42  ;;  %vm1588_vm6 = vmand %vm477_vm4, %vm478_vm5  ;;  %vm777_vm7 = vcmask 31744   ;;  %vm1137_vm8 = vcmask 1041408  }
  0x11   :  { %v108_v4 = vunpack.c.l.b16 %v70_v63  ;;  %v109_v7 = vunpack.c.l.b16 %v71_v1  ;;  %vm823_vm9 = vcmask 64512   ;;  %vm854_vm10 = vcmask 97280  }
  0x12   :  { %v118_v45 = vpack.c.b16 %v107_v44, %v106_v43  ;;  %v56_v43 = vld [vmem:[#allocation2 + $0x60] sm:$0xff]  ;;  %v57_v44 = vld [vmem:[#allocation2 + $0x68] sm:$0xff]  ;;  %vm919_vm11 = vcmask 162816   ;;  %vm952_vm12 = vcmask 195584   ;;  %vm984_vm13 = vcmask 228352  }
  0x13   :  { %v119_v10 = vpack.c.b16 %v109_v7, %v108_v4  ;;  %vm1016_vm14 = vcmask 261120   ;;  %vm1112_vm15 = vcmask 293888  }
  0x1e   :  { %1367 = vmatmul.msk.bf16.gmra.mxu0 %vm128_vm0, %v115_v21 }
  0x2e   :  { %1368 = vmatmul.msk.bf16.gmra.mxu0 %vm128_vm0, %v116_v29 }
  0x3e   :  { %1369 = vmatmul.msk.bf16.gmra.mxu0 %vm128_vm0, %v117_v36 }
  0x4e   :  { %1370 = vmatmul.msk.bf16.gmra.mxu0 %vm128_vm0, %v118_v45 }
  0x5e   :  { %1371 = vmatmul.msk.bf16.gmra.mxu0 %vm128_vm0, %v119_v10 }
  0x8b   :  { %v162_v47 = vpop.f32.mrf.mxu0 }
  0x8c   :  { %v163_v48 = vadd.f32 %v1564_v46, %v162_v47 }
  0x8e   :  { %v202_v49 = vmax.f32 %v163_v48, 0.0  ;;  %v72_v48 = vpack.c.bf16 %v56_v43, %v56_v43 }
  0x90   :  { %v218_v50 = vpack.c.bf16 %v202_v49, %v202_v49  ;;  %v73_v49 = vpack.c.bf16 %v57_v44, %v57_v44 }
  0x91   :  { %v197_v52 = vpop.f32.mrf.mxu3 }
  0x92   :  { %v250_v51 = vunpack.c.l.b16 %v218_v50  ;;  %499 = vrot.lane.b32.xlu0 %v218_v50, %s1493_s0  ;;  %v198_v54 = vadd.f32 %v1564_v46, %v197_v52  ;;  %v111_v52 = vunpack.c.l.b16 %v73_v49 }
  0x93   :  { %v164_v53 = vpop.f32.mrf.mxu0 }
  0x94   :  { %v165_v55 = vadd.f32 %v1564_v46, %v164_v53  ;;  %v266_v56 = vpack.c.b16 %v250_v51, %v250_v51  ;;  %v216_v57 = vmax.f32 %v198_v54, 0.0  ;;  %v110_v51 = vunpack.c.l.b16 %v72_v48 }
  0x96   :  { %v203_v60 = vmax.f32 %v165_v55, 0.0  ;;  %v283_v61 = vshrl.u32 %v266_v56, 16  ;;  %v286_v62 = vshll.u32 %v266_v56, 16  ;;  %v1570_v0 = vpack.c.bf16 %v216_v57, %v216_v57 }
  0x97   :  { %v120_v54 = vpack.c.b16 %v111_v52, %v110_v51 }
  0x98   :  { %v219_v2 = vpack.c.bf16 %v203_v60, %v203_v60  ;;  %v285_v3 = vrot.slane %v283_v61, 7  ;;  %v429_v6 = vrot.slane %v286_v62, 1  ;;  %v264_v8 = vunpack.c.l.b16 %v1570_v0 }
  0x99   :  { %1372 = vmatmul.msk.bf16.gmra.mxu0 %vm128_vm0, %v120_v54 }
  0x9a   :  { %501 = vrot.lane.b32.xlu1 %v219_v2, %s1493_s0  ;;  %619 = vrot.lane.b32.xlu0 %v266_v56, %s1497_s4  ;;  %v288_v9 = vor.u32 %v286_v62, %v285_v3  ;;  %v251_v12 = vunpack.c.l.b16 %v219_v2  ;;  %v430_v13 = vor.u32 %v429_v6, %v283_v61  ;;  %v1586_v14 = vpack.c.b16 %v264_v8, %v264_v8 }
  0x9b   :  { %v167_v16 = vpop.f32.mrf.mxu0 }
  0x9c   :  { %v1581_v11 = vsel %vm1572_vm3, 0, %v288_v9  ;;  %v267_v17 = vpack.c.b16 %v251_v12, %v251_v12  ;;  %v480_v18 = vsel %vm1588_vm6, %v430_v13, 0  ;;  %v168_v19 = vadd.f32 %v1564_v46, %v167_v16 }
  0x9d   :  { %587 = vrot.lane.b32.xlu2 %v1581_v11, %s1498_s14  ;;  %v384_v22 = vshll.u32 %v1586_v14, 16  ;;  %v381_v23 = vshrl.u32 %v1586_v14, 16 }
  0x9e   :  { %v204_v20 = vmax.f32 %v168_v19, 0.0  ;;  %v293_v21 = vshll.u32 %v267_v17, 16  ;;  %v290_v28 = vshrl.u32 %v267_v17, 16 }
  0x9f   :  { %v457_v26 = vrot.slane %v384_v22, 1  ;;  %v383_v29 = vrot.slane %v381_v23, 7 }
  0xa0   :  { %v220_v24 = vpack.c.bf16 %v204_v20, %v204_v20  ;;  %v431_v25 = vrot.slane %v293_v21, 1  ;;  %v292_v36 = vrot.slane %v290_v28, 7 }
  0xa1   :  { %v458_v31 = vor.u32 %v457_v26, %v381_v23  ;;  %v386_v33 = vor.u32 %v384_v22, %v383_v29 }
  0xa2   :  { %743 = vrot.lane.b32.xlu0 %v1586_v14, %s1496_s11  ;;  %543 = vrot.lane.b32.xlu1 %v480_v18, %s1491_s30  ;;  %v252_v27 = vunpack.c.l.b16 %v220_v24  ;;  %v432_v30 = vor.u32 %v431_v25, %v290_v28  ;;  %v295_v39 = vor.u32 %v293_v21, %v292_v36  ;;  %v1662_v25 = vpop.permute.xlu2 %699  ;;  %v1664_v28 = vpop.permute.xlu0 %497 }
  0xa3   :  { %v1608_v35 = vsel %vm1588_vm6, %v458_v31, 0  ;;  %v1615_v38 = vsel %vm1572_vm3, 0, %v386_v33  ;;  %v169_v40 = vpop.f32.mrf.mxu0 }
  0xa4   :  { %v268_v32 = vpack.c.b16 %v252_v27, %v252_v27  ;;  %v481_v34 = vsel %vm1588_vm6, %v432_v30, 0  ;;  %v170_v45 = vadd.f32 %v1564_v46, %v169_v40  ;;  %v1622_v47 = vsel %vm1572_vm3, 0, %v295_v39 }
  0xa5   :  { %653 = vrot.lane.b32.xlu2 %v480_v18, %s1499_s15 }
  0xa6   :  { %v300_v37 = vshll.u32 %v268_v32, 16  ;;  %v297_v41 = vshrl.u32 %v268_v32, 16  ;;  %v205_v53 = vmax.f32 %v170_v45, 0.0 }
  0xa8   :  { %v433_v42 = vrot.slane %v300_v37, 1  ;;  %v221_v56 = vpack.c.bf16 %v205_v53, %v205_v53  ;;  %v299_v62 = vrot.slane %v297_v41, 7 }
  0xaa   :  { %717 = vrot.lane.b32.xlu0 %v267_v17, %s1496_s11  ;;  %621 = vrot.lane.b32.xlu1 %v267_v17, %s1497_s4  ;;  %v434_v50 = vor.u32 %v433_v42, %v297_v41  ;;  %v253_v57 = vunpack.c.l.b16 %v221_v56  ;;  %v302_v2 = vor.u32 %v300_v37, %v299_v62  ;;  %v1679_v37 = vpop.permute.xlu1 %541  ;;  %v1684_v39 = vpop.permute.xlu0 %761 }
  0xab   :  { %v172_v58 = vpop.f32.mrf.mxu0 }
  0xac   :  { %v482_v55 = vsel %vm1588_vm6, %v434_v50, 0  ;;  %v173_v59 = vadd.f32 %v1564_v46, %v172_v58  ;;  %v269_v60 = vpack.c.b16 %v253_v57, %v253_v57  ;;  %v415_v6 = vsel %vm1572_vm3, 0, %v302_v2  ;;  %v1052_v57 = vld [vmem:[%s2230_s2 + $0x10] sm:$0x3] }
  0xad   :  { %503 = vrot.lane.b32.xlu2 %v220_v24, %s1493_s0  ;;  %v1106_v58 = vunpack.c.l.b16 %v1052_v57 }
  0xae   :  { %v206_v61 = vmax.f32 %v173_v59, 0.0  ;;  %v304_v63 = vshrl.u32 %v269_v60, 16  ;;  %v307_v4 = vshll.u32 %v269_v60, 16 }
  0xb0   :  { %v222_v1 = vpack.c.bf16 %v206_v61, %v206_v61  ;;  %v306_v3 = vrot.slane %v304_v63, 7  ;;  %v435_v9 = vrot.slane %v307_v4, 1 }
  0xb2   :  { %655 = vrot.lane.b32.xlu0 %v481_v34, %s1499_s15  ;;  %773 = vrot.lane.b32.xlu1 %v1608_v35, %s1495_s10  ;;  %v309_v7 = vor.u32 %v307_v4, %v306_v3  ;;  %v254_v10 = vunpack.c.l.b16 %v222_v1  ;;  %v436_v13 = vor.u32 %v435_v9, %v304_v63  ;;  %v1691_v45 = vpop.permute.xlu1 %731  ;;  %v1400_v9 = vld [vmem:[%s2230_s2 + $0x8] sm:$0xff] }
  0xb3   :  { %v174_v12 = vpop.f32.mrf.mxu0 }
  0xb4   :  { %v1646_v8 = vsel %vm1572_vm3, 0, %v309_v7  ;;  %v175_v16 = vadd.f32 %v1564_v46, %v174_v12  ;;  %v270_v17 = vpack.c.b16 %v254_v10, %v254_v10  ;;  %v483_v18 = vsel %vm1588_vm6, %v436_v13, 0 }
  0xb5   :  { %711 = vrot.lane.b32.xlu2 %v1615_v38, %s1494_s1 }
  0xb6   :  { %v207_v19 = vmax.f32 %v175_v16, 0.0  ;;  %v311_v20 = vshrl.u32 %v270_v17, 16  ;;  %v314_v21 = vshll.u32 %v270_v17, 16 }
  0xb8   :  { %v223_v22 = vpack.c.bf16 %v207_v19, %v207_v19  ;;  %v313_v23 = vrot.slane %v311_v20, 7  ;;  %v437_v24 = vrot.slane %v314_v21, 1 }
  0xba   :  { %545 = vrot.lane.b32.xlu0 %v481_v34, %s1491_s30  ;;  %685 = vrot.lane.b32.xlu1 %v1622_v47, %s1494_s1  ;;  %v316_v26 = vor.u32 %v314_v21, %v313_v23  ;;  %v438_v27 = vor.u32 %v437_v24, %v311_v20  ;;  %v255_v31 = vunpack.c.l.b16 %v223_v22 }
  0xbc   :  { %v1668_v29 = vsel %vm1572_vm3, 0, %v316_v26  ;;  %v484_v30 = vsel %vm1588_vm6, %v438_v27, 0  ;;  %v271_v36 = vpack.c.b16 %v255_v31, %v255_v31 }
  0xbd   :  { %589 = vrot.lane.b32.xlu2 %v1622_v47, %s1498_s14 }
  0xbe   :  { %v318_v41 = vshrl.u32 %v271_v36, 16  ;;  %v321_v48 = vshll.u32 %v271_v36, 16 }
  0xc0   :  { %v320_v44 = vrot.slane %v318_v41, 7 }
  0xc2   :  { %749 = vrot.lane.b32.xlu0 %v482_v55, %s1495_s10  ;;  %719 = vrot.lane.b32.xlu1 %v268_v32, %s1496_s11  ;;  %v323_v51 = vor.u32 %v321_v48, %v320_v44 }
  0xc5   :  { %747 = vrot.lane.b32.xlu2 %v481_v34, %s1495_s10 }
  0xca   :  { %657 = vrot.lane.b32.xlu0 %v482_v55, %s1499_s15  ;;  %623 = vrot.lane.b32.xlu1 %v268_v32, %s1497_s4  ;;  %v177_v32 = vpop.f32.mrf.mxu0 }
  0xcb   :  { %v178_v34 = vadd.f32 %v1564_v46, %v177_v32 }
  0xcd   :  { %505 = vrot.lane.b32.xlu2 %v221_v56, %s1493_s0  ;;  %v208_v40 = vmax.f32 %v178_v34, 0.0  ;;  %v439_v56 = vrot.slane %v321_v48, 1 }
  0xcf   :  { %v224_v43 = vpack.c.bf16 %v208_v40, %v208_v40  ;;  %v440_v62 = vor.u32 %v439_v56, %v318_v41  ;;  %v780_v40 = vsel %vm777_vm7, 0, %v1664_v28 }
  0xd1   :  { %v256_v50 = vunpack.c.l.b16 %v224_v43 }
  0xd2   :  { %507 = vrot.lane.b32.xlu0 %v222_v1, %s1493_s0  ;;  %547 = vrot.lane.b32.xlu1 %v482_v55, %s1491_s30  ;;  %v1701_v55 = vsel %vm1572_vm3, 0, %v323_v51  ;;  %v179_v61 = vpop.f32.mrf.mxu0  ;;  %v1109_v1 = vpack.c.b16 %v1106_v58, %v1106_v58 }
  0xd3   :  { %v272_v54 = vpack.c.b16 %v256_v50, %v256_v50  ;;  %v180_v4 = vadd.f32 %v1564_v46, %v179_v61  ;;  %v1751_v50 = vsel %vm823_vm9, %v780_v40, %v1679_v37 }
  0xd4   :  { %v1139_v3 = vsel %vm1137_vm8, %v1109_v1, 0 }
  0xd5   :  { %687 = vrot.lane.b32.xlu2 %v415_v6, %s1494_s1  ;;  %v325_v63 = vshrl.u32 %v272_v54, 16  ;;  %1146 = vmatpush.bf16.msra.mxu1 %v1139_v3  ;;  %v328_v10 = vshll.u32 %v272_v54, 16  ;;  %v209_v12 = vmax.f32 %v180_v4, 0.0 }
  0xd6   :  { %1402 = vmatpush.bf16.msrb.mxu3 %v1139_v3 }
  0xd7   :  { %v327_v7 = vrot.slane %v325_v63, 7  ;;  %v225_v20 = vpack.c.bf16 %v209_v12, %v209_v12 }
  0xd9   :  { %1147 = vmatpush.bf16.msra.mxu1 %v1400_v9  ;;  %v257_v23 = vunpack.c.l.b16 %v225_v20 }
  0xda   :  { %593 = vrot.lane.b32.xlu0 %v1646_v8, %s1498_s14  ;;  %721 = vrot.lane.b32.xlu1 %v269_v60, %s1496_s11  ;;  %v182_v32 = vpop.f32.mrf.mxu0 }
  0xdb   :  { %1403 = vmatpush.bf16.msrb.mxu3 %v1400_v9  ;;  %v273_v31 = vpack.c.b16 %v257_v23, %v257_v23  ;;  %v183_v34 = vadd.f32 %v1564_v46, %v182_v32 }
  0xdd   :  { %591 = vrot.lane.b32.xlu2 %v415_v6, %s1498_s14  ;;  %v335_v44 = vshll.u32 %v273_v31, 16  ;;  %v210_v48 = vmax.f32 %v183_v34, 0.0 }
  0xdf   :  { %v226_v56 = vpack.c.bf16 %v210_v48, %v210_v48 }
  0xe2   :  { %751 = vrot.lane.b32.xlu0 %v483_v18, %s1495_s10  ;;  %659 = vrot.lane.b32.xlu1 %v483_v18, %s1499_s15  ;;  %v184_v1 = vpop.f32.mrf.mxu0 }
  0xe5   :  { %625 = vrot.lane.b32.xlu2 %v269_v60, %s1497_s4 }
  0xea   :  { %509 = vrot.lane.b32.xlu0 %v223_v22, %s1493_s0  ;;  %549 = vrot.lane.b32.xlu1 %v483_v18, %s1491_s30  ;;  %v1399_v18 = vld [vmem:[%s2230_s2] sm:$0xff]  ;;  %v441_v22 = vrot.slane %v328_v10, 1 }
  0xeb   :  { %1148 = vmatpush.bf16.msra.mxu1 %v1399_v18  ;;  %1404 = vmatpush.bf16.msrb.mxu3 %v1399_v18 }
  0xec   :  { %v442_v27 = vor.u32 %v441_v22, %v325_v63  ;;  %v258_v63 = vunpack.c.l.b16 %v226_v56 }
  0xed   :  { %689 = vrot.lane.b32.xlu2 %v1646_v8, %s1494_s1 }
  0xee   :  { %v274_v12 = vpack.c.b16 %v258_v63, %v258_v63 }
  0xf2   :  { %691 = vrot.lane.b32.xlu0 %v1668_v29, %s1494_s1  ;;  %753 = vrot.lane.b32.xlu1 %v484_v30, %s1495_s10 }
  0xf5   :  { %723 = vrot.lane.b32.xlu2 %v270_v17, %s1496_s11 }
  0xf7   :  { %v1676_v33 = vpop.permute.xlu2 %587 }
  0xf8   :  { %v856_v28 = vsel %vm854_vm10, %v1751_v50, %v1676_v33 }
  0xfa   :  { %595 = vrot.lane.b32.xlu0 %v1668_v29, %s1498_s14  ;;  %661 = vrot.lane.b32.xlu1 %v484_v30, %s1499_s15 }
  0xfd   :  { %627 = vrot.lane.b32.xlu2 %v270_v17, %s1497_s4  ;;  %v330_v17 = vor.u32 %v328_v10, %v327_v7  ;;  %v185_v7 = vadd.f32 %v1564_v46, %v184_v1 }
  0xff   :  { %v1687_v42 = vpop.permute.xlu2 %653  ;;  %v1732_v21 = vsel %vm1572_vm3, 0, %v330_v17 }
 0x102   :  { %629 = vrot.lane.b32.xlu0 %v271_v36, %s1497_s4  ;;  %511 = vrot.lane.b32.xlu1 %v224_v43, %s1493_s0 }
 0x104   :  { %v1693_v49 = vpop.permute.xlu0 %499 }
 0x105   :  { %551 = vrot.lane.b32.xlu2 %v484_v30, %s1491_s30 }
 0x107   :  { %v504_v52 = vpop.permute.xlu2 %503 }
 0x108   :  { %v1697_v53 = vsel %vm777_vm7, %v415_v6, %v504_v52  ;;  %v485_v6 = vsel %vm1588_vm6, %v440_v62, 0  ;;  %v332_v52 = vshrl.u32 %v273_v31, 16 }
 0x10a   :  { %693 = vrot.lane.b32.xlu0 %v1701_v55, %s1494_s1  ;;  %597 = vrot.lane.b32.xlu1 %v1701_v55, %s1498_s14  ;;  %v334_v62 = vrot.slane %v332_v52, 7 }
 0x10c   :  { %v1710_v59 = vpop.permute.xlu1 %501  ;;  %v620_v60 = vpop.permute.xlu0 %619  ;;  %v337_v10 = vor.u32 %v335_v44, %v334_v62 }
 0x10d   :  { %725 = vrot.lane.b32.xlu2 %v271_v36, %s1496_s11  ;;  %v486_v36 = vsel %vm1588_vm6, %v442_v27, 0  ;;  %v888_v57 = vsel %vm128_vm0, %v856_v28, %v620_v60  ;;  %v783_v60 = vsel %vm777_vm7, %v1581_v11, %v1693_v49  ;;  %v211_v49 = vmax.f32 %v185_v7, 0.0 }
 0x10e   :  { %v921_v3 = vsel %vm919_vm11, %v888_v57, %v1687_v42  ;;  %v342_v27 = vshll.u32 %v274_v12, 16 }
 0x10f   :  { %v1713_v2 = vpop.permute.xlu2 %711  ;;  %v227_v40 = vpack.c.bf16 %v211_v49, %v211_v49 }
 0x111   :  { %v259_v28 = vunpack.c.l.b16 %v227_v40 }
 0x112   :  { %727 = vrot.lane.b32.xlu0 %v272_v54, %s1496_s11  ;;  %755 = vrot.lane.b32.xlu1 %v485_v6, %s1495_s10 }
 0x113   :  { %v275_v62 = vpack.c.b16 %v259_v28, %v259_v28 }
 0x114   :  { %v1724_v13 = vpop.permute.xlu0 %743  ;;  %v544_v16 = vpop.permute.xlu1 %543 }
 0x115   :  { %663 = vrot.lane.b32.xlu2 %v485_v6, %s1499_s15 }
 0x117   :  { %v590_v19 = vpop.permute.xlu2 %589 }
 0x11a   :  { %631 = vrot.lane.b32.xlu0 %v272_v54, %s1497_s4  ;;  %695 = vrot.lane.b32.xlu1 %v1732_v21, %s1494_s1  ;;  %v443_v54 = vrot.slane %v335_v44, 1 }
 0x11c   :  { %v718_v24 = vpop.permute.xlu0 %717  ;;  %v622_v26 = vpop.permute.xlu1 %621  ;;  %v444_v61 = vor.u32 %v443_v54, %v332_v52  ;;  %v445_v52 = vrot.slane %v342_v27, 1 }
 0x11d   :  { %553 = vrot.lane.b32.xlu2 %v485_v6, %s1491_s30  ;;  %v827_v6 = vsel %vm823_vm9, %v783_v60, %v544_v16 }
 0x11e   :  { %v487_v9 = vsel %vm1588_vm6, %v444_v61, 0  ;;  %v858_v42 = vsel %vm854_vm10, %v827_v6, %v590_v19  ;;  %v420_v19 = vsel %vm1572_vm3, 0, %v337_v10  ;;  %v346_v6 = vshrl.u32 %v275_v62, 16 }
 0x11f   :  { %v748_v30 = vpop.permute.xlu2 %747  ;;  %v890_v18 = vsel %vm128_vm0, %v858_v42, %v622_v26  ;;  %v339_v26 = vshrl.u32 %v274_v12, 16  ;;  %v349_v42 = vshll.u32 %v275_v62, 16 }
 0x120   :  { %v348_v10 = vrot.slane %v346_v6, 7 }
 0x121   :  { %v341_v48 = vrot.slane %v339_v26, 7  ;;  %v446_v57 = vor.u32 %v445_v52, %v339_v26 }
 0x122   :  { %555 = vrot.lane.b32.xlu0 %v486_v36, %s1491_s30  ;;  %599 = vrot.lane.b32.xlu1 %v1732_v21, %s1498_s14  ;;  %v351_v49 = vor.u32 %v349_v42, %v348_v10 }
 0x123   :  { %v488_v1 = vsel %vm1588_vm6, %v446_v57, 0 }
 0x124   :  { %v656_v41 = vpop.permute.xlu0 %655  ;;  %v1746_v43 = vpop.permute.xlu1 %773 }
 0x125   :  { %757 = vrot.lane.b32.xlu2 %v486_v36, %s1495_s10  ;;  %v923_v11 = vsel %vm919_vm11, %v890_v18, %v656_v41  ;;  %v187_v41 = vpop.f32.mrf.mxu0 }
 0x126   :  { %v188_v61 = vadd.f32 %v1564_v46, %v187_v41 }
 0x127   :  { %v1753_v51 = vpop.permute.xlu2 %505 }
 0x12a   :  { %729 = vrot.lane.b32.xlu0 %v273_v31, %s1496_s11  ;;  %633 = vrot.lane.b32.xlu1 %v273_v31, %s1497_s4 }
 0x12c   :  { %v1761_v37 = vpop.permute.xlu0 %545  ;;  %v686_v58 = vpop.permute.xlu1 %685 }
 0x12d   :  { %665 = vrot.lane.b32.xlu2 %v486_v36, %s1499_s15  ;;  %v954_v33 = vsel %vm952_vm12, %v921_v3, %v686_v58  ;;  %v189_v3 = vpop.f32.mrf.mxu0 }
 0x12e   :  { %v986_v17 = vsel %vm984_vm13, %v954_v33, %v718_v24  ;;  %v212_v33 = vmax.f32 %v188_v61, 0.0  ;;  %v190_v41 = vadd.f32 %v1564_v46, %v189_v3 }
 0x12f   :  { %v688_v4 = vpop.permute.xlu2 %687  ;;  %v1018_v23 = vsel %vm1016_vm14, %v986_v17, %v748_v30 }
 0x130   :  { %v956_v16 = vsel %vm952_vm12, %v923_v11, %v688_v4  ;;  %v1073_v36 = vunpack.c.l.b16 %v1018_v23  ;;  %v213_v57 = vmax.f32 %v190_v41, 0.0 }
 0x132   :  { %667 = vrot.lane.b32.xlu0 %v487_v9, %s1499_s15  ;;  %513 = vrot.lane.b32.xlu1 %v226_v56, %s1493_s0  ;;  %v344_v56 = vor.u32 %v342_v27, %v341_v48 }
 0x134   :  { %v750_v20 = vpop.permute.xlu0 %749  ;;  %v720_v22 = vpop.permute.xlu1 %719  ;;  %v1802_v63 = vsel %vm1572_vm3, 0, %v344_v56  ;;  %v786_v56 = vsel %vm777_vm7, %v1622_v47, %v1710_v59 }
 0x135   :  { %v988_v24 = vsel %vm984_vm13, %v956_v16, %v720_v22  ;;  %601 = vrot.lane.b32.xlu2 %v420_v19, %s1498_s14  ;;  %v192_v17 = vpop.f32.mrf.mxu0  ;;  %v829_v3 = vsel %vm823_vm9, %v786_v56, %v1761_v37 }
 0x136   :  { %v1020_v31 = vsel %vm1016_vm14, %v988_v24, %v750_v20  ;;  %v193_v20 = vadd.f32 %v1564_v46, %v192_v17  ;;  %v229_v17 = vpack.c.bf16 %v213_v57, %v213_v57 }
 0x137   :  { %v1074_v32 = vunpack.c.l.b16 %v1020_v31  ;;  %v1787_v34 = vpop.permute.xlu2 %591 }
 0x138   :  { %v214_v23 = vmax.f32 %v193_v20, 0.0  ;;  %v261_v56 = vunpack.c.l.b16 %v229_v17 }
 0x139   :  { %v1089_v44 = vpack.c.b16 %v1074_v32, %v1073_v36 }
 0x13a   :  { %515 = vrot.lane.b32.xlu0 %v227_v40, %s1493_s0  ;;  %697 = vrot.lane.b32.xlu1 %v420_v19, %s1494_s1  ;;  %v447_v19 = vrot.slane %v349_v42, 1  ;;  %v1829_v40 = vpack.c.bf16 %v214_v23, %v214_v23 }
 0x13b   :  { %1382 = vmatmul.msk.bf16.vlgmr.msra.gmra.mxu1 %vm1112_vm15, %v1089_v44 }
 0x13c   :  { %v1792_v30 = vpop.permute.xlu0 %657  ;;  %v1794_v54 = vpop.permute.xlu1 %623  ;;  %v448_v31 = vor.u32 %v447_v19, %v346_v6  ;;  %v262_v28 = vunpack.c.l.b16 %v1829_v40 }
 0x13d   :  { %759 = vrot.lane.b32.xlu2 %v487_v9, %s1495_s10  ;;  %v228_v9 = vpack.c.bf16 %v212_v33, %v212_v33  ;;  %v194_v32 = vpop.f32.mrf.mxu0 }
 0x13e   :  { %v489_v48 = vsel %vm1588_vm6, %v448_v31, 0  ;;  %v195_v52 = vadd.f32 %v1564_v46, %v194_v32  ;;  %v1857_v10 = vpack.c.b16 %v262_v28, %v262_v28 }
 0x13f   :  { %v1797_v58 = vpop.permute.xlu2 %625  ;;  %v260_v22 = vunpack.c.l.b16 %v228_v9 }
 0x140   :  { %v215_v33 = vmax.f32 %v195_v52, 0.0  ;;  %v367_v52 = vshrl.u32 %v1857_v10, 16 }
 0x141   :  { %v1824_v24 = vpack.c.b16 %v260_v22, %v260_v22 }
 0x142   :  { %603 = vrot.lane.b32.xlu0 %v1802_v63, %s1498_s14  ;;  %669 = vrot.lane.b32.xlu1 %v488_v1, %s1499_s15  ;;  %v1862_v20 = vpack.c.bf16 %v215_v33, %v215_v33  ;;  %v1898_v33 = vpack.c.b16 %v261_v56, %v261_v56 }
 0x143   :  { %v356_v44 = vshll.u32 %v1824_v24, 16  ;;  %v353_v6 = vshrl.u32 %v1824_v24, 16 }
 0x144   :  { %v1809_v60 = vpop.permute.xlu0 %507  ;;  %v548_v4 = vpop.permute.xlu1 %547  ;;  %v263_v41 = vunpack.c.l.b16 %v1862_v20 }
 0x145   :  { %635 = vrot.lane.b32.xlu2 %v274_v12, %s1497_s4  ;;  %v1818_v12 = vsel %vm1572_vm3, 0, %v351_v49  ;;  %v831_v59 = vsel %vm823_vm9, %v1697_v53, %v548_v4  ;;  %v355_v22 = vrot.slane %v353_v6, 7  ;;  %v370_v4 = vshll.u32 %v1857_v10, 16 }
 0x147   :  { %v690_v7 = vpop.permute.xlu2 %689  ;;  %v453_v28 = vrot.slane %v370_v4, 1 }
 0x14a   :  { %637 = vrot.lane.b32.xlu0 %v275_v62, %s1497_s4  ;;  %517 = vrot.lane.b32.xlu1 %v228_v9, %s1493_s0  ;;  %v860_v9 = vsel %vm854_vm10, %v829_v3, %v1787_v34 }
 0x14b   :  { %v892_v47 = vsel %vm128_vm0, %v860_v9, %v1794_v54 }
 0x14c   :  { %v594_v18 = vpop.permute.xlu0 %593  ;;  %v722_v11 = vpop.permute.xlu1 %721  ;;  %v925_v34 = vsel %vm919_vm11, %v892_v47, %v1792_v30 }
 0x14d   :  { %557 = vrot.lane.b32.xlu2 %v488_v1, %s1491_s30  ;;  %v449_v1 = vrot.slane %v356_v44, 1  ;;  %v862_v37 = vsel %vm854_vm10, %v831_v59, %v594_v18  ;;  %v958_v53 = vsel %vm952_vm12, %v925_v34, %v690_v7 }
 0x14e   :  { %v894_v54 = vsel %vm128_vm0, %v862_v37, %v1797_v58  ;;  %v990_v18 = vsel %vm984_vm13, %v958_v53, %v722_v11  ;;  %v358_v58 = vor.u32 %v356_v44, %v355_v22  ;;  %v454_v44 = vor.u32 %v453_v28, %v367_v52 }
 0x14f   :  { %v724_v16 = vpop.permute.xlu2 %723  ;;  %v450_v49 = vor.u32 %v449_v1, %v353_v6  ;;  %v1888_v1 = vpack.c.b16 %v263_v41, %v263_v41  ;;  %v363_v37 = vshll.u32 %v1898_v33, 16  ;;  %v369_v22 = vrot.slane %v367_v52, 7 }
 0x150   :  { %v1892_v3 = vsel %vm1572_vm3, 0, %v358_v58  ;;  %v792_v52 = vsel %vm777_vm7, %v1646_v8, %v1753_v51 }
 0x151   :  { %v1876_v30 = vsel %vm1588_vm6, %v450_v49, 0  ;;  %v377_v47 = vshll.u32 %v1888_v1, 16  ;;  %v374_v34 = vshrl.u32 %v1888_v1, 16 }
 0x152   :  { %701 = vrot.lane.b32.xlu0 %v1818_v12, %s1494_s1  ;;  %605 = vrot.lane.b32.xlu1 %v1818_v12, %s1498_s14 }
 0x153   :  { %v455_v49 = vrot.slane %v377_v47, 1 }
 0x154   :  { %v752_v26 = vpop.permute.xlu0 %751  ;;  %v660_v27 = vpop.permute.xlu1 %659 }
 0x155   :  { %733 = vrot.lane.b32.xlu2 %v275_v62, %s1496_s11  ;;  %v927_v19 = vsel %vm919_vm11, %v894_v54, %v660_v27  ;;  %v1022_v32 = vsel %vm1016_vm14, %v990_v18, %v752_v26  ;;  %v451_v18 = vrot.slane %v363_v37, 1 }
 0x156   :  { %v1075_v57 = vunpack.c.l.b16 %v1022_v32 }
 0x157   :  { %v1827_v36 = vpop.permute.xlu2 %627 }
 0x15a   :  { %735 = vrot.lane.b32.xlu0 %v1824_v24, %s1496_s11  ;;  %763 = vrot.lane.b32.xlu1 %v489_v48, %s1495_s10 }
 0x15c   :  { %v1843_v61 = vpop.permute.xlu0 %509  ;;  %v1845_v62 = vpop.permute.xlu1 %549 }
 0x15d   :  { %671 = vrot.lane.b32.xlu2 %v489_v48, %s1499_s15  ;;  %v833_v28 = vsel %vm823_vm9, %v792_v52, %v1845_v62 }
 0x15f   :  { %v1859_v42 = vpop.permute.xlu2 %551 }
 0x162   :  { %519 = vrot.lane.b32.xlu0 %v229_v17, %s1493_s0  ;;  %559 = vrot.lane.b32.xlu1 %v489_v48, %s1491_s30  ;;  %v1906_v17 = vsel %vm1588_vm6, %v454_v44, 0 }
 0x164   :  { %v692_v23 = vpop.permute.xlu0 %691  ;;  %v754_v31 = vpop.permute.xlu1 %753 }
 0x165   :  { %v960_v7 = vsel %vm952_vm12, %v927_v19, %v692_v23  ;;  %765 = vrot.lane.b32.xlu2 %v1876_v30, %s1495_s10  ;;  %v456_v19 = vor.u32 %v455_v49, %v374_v34  ;;  %v372_v23 = vor.u32 %v370_v4, %v369_v22 }
 0x166   :  { %v992_v11 = vsel %vm984_vm13, %v960_v7, %v724_v16 }
 0x167   :  { %v1024_v27 = vsel %vm1016_vm14, %v992_v11, %v754_v31  ;;  %v1885_v48 = vpop.permute.xlu2 %725  ;;  %v360_v31 = vshrl.u32 %v1898_v33, 16  ;;  %v1923_v7 = vsel %vm1588_vm6, %v456_v19, 0 }
 0x168   :  { %v1076_v26 = vunpack.c.l.b16 %v1024_v27 }
 0x169   :  { %v452_v41 = vor.u32 %v451_v18, %v360_v31  ;;  %v362_v56 = vrot.slane %v360_v31, 7 }
 0x16a   :  { %643 = vrot.lane.b32.xlu0 %v1857_v10, %s1497_s4  ;;  %703 = vrot.lane.b32.xlu1 %v1892_v3, %s1494_s1  ;;  %v1090_v16 = vpack.c.b16 %v1076_v26, %v1075_v57  ;;  %v376_v57 = vrot.slane %v374_v34, 7 }
 0x16b   :  { %v491_v11 = vsel %vm1588_vm6, %v452_v41, 0  ;;  %v365_v62 = vor.u32 %v363_v37, %v362_v56 }
 0x16c   :  { %v596_v6 = vpop.permute.xlu0 %595  ;;  %v662_v9 = vpop.permute.xlu1 %661  ;;  %1383 = vmatmul.msk.bf16.gmra.mxu1 %vm1112_vm15, %v1090_v16  ;;  %v795_v16 = vsel %vm777_vm7, %v1668_v29, %v1809_v60 }
 0x16d   :  { %561 = vrot.lane.b32.xlu2 %v1876_v30, %s1491_s30  ;;  %v864_v26 = vsel %vm854_vm10, %v833_v28, %v596_v6  ;;  %v835_v8 = vsel %vm823_vm9, %v795_v16, %v1859_v42  ;;  %v379_v6 = vor.u32 %v377_v47, %v376_v57  ;;  %v1963_v42 = vsel %vm1572_vm3, 0, %v365_v62 }
 0x16e   :  { %v896_v51 = vsel %vm128_vm0, %v864_v26, %v1827_v36 }
 0x16f   :  { %v664_v59 = vpop.permute.xlu2 %663  ;;  %v929_v18 = vsel %vm919_vm11, %v896_v51, %v662_v9  ;;  %v1967_v36 = vsel %vm1572_vm3, 0, %v379_v6 }
 0x172   :  { %565 = vrot.lane.b32.xlu0 %v1906_v17, %s1491_s30  ;;  %521 = vrot.lane.b32.xlu1 %v1829_v40, %s1493_s0  ;;  %v1927_v40 = vsel %vm1572_vm3, 0, %v372_v23 }
 0x174   :  { %v630_v53 = vpop.permute.xlu0 %629  ;;  %v1914_v54 = vpop.permute.xlu1 %511 }
 0x175   :  { %607 = vrot.lane.b32.xlu2 %v1892_v3, %s1498_s14  ;;  %v801_v26 = vsel %vm777_vm7, %v1732_v21, %v1914_v54  ;;  %v798_v21 = vsel %vm777_vm7, %v1701_v55, %v1843_v61 }
 0x177   :  { %v1919_v32 = vpop.permute.xlu2 %553 }
 0x17a   :  { %679 = vrot.lane.b32.xlu0 %v1923_v7, %s1499_s15  ;;  %611 = vrot.lane.b32.xlu1 %v1927_v40, %s1498_s14 }
 0x17c   :  { %v694_v4 = vpop.permute.xlu0 %693  ;;  %v598_v58 = vpop.permute.xlu1 %597 }
 0x17d   :  { %563 = vrot.lane.b32.xlu2 %v491_v11, %s1491_s30  ;;  %v866_v22 = vsel %vm854_vm10, %v835_v8, %v598_v58  ;;  %v962_v29 = vsel %vm952_vm12, %v929_v18, %v694_v4 }
 0x17e   :  { %v898_v60 = vsel %vm128_vm0, %v866_v22, %v630_v53  ;;  %v994_v9 = vsel %vm984_vm13, %v962_v29, %v1885_v48 }
 0x17f   :  { %v758_v27 = vpop.permute.xlu2 %757  ;;  %v931_v53 = vsel %vm919_vm11, %v898_v60, %v664_v59 }
 0x182   :  { %771 = vrot.lane.b32.xlu0 %v1923_v7, %s1495_s10  ;;  %645 = vrot.lane.b32.xlu1 %v1888_v1, %s1497_s4 }
 0x184   :  { %v728_v44 = vpop.permute.xlu0 %727  ;;  %v756_v49 = vpop.permute.xlu1 %755 }
 0x185   :  { %677 = vrot.lane.b32.xlu2 %v1906_v17, %s1499_s15  ;;  %v1026_v19 = vsel %vm1016_vm14, %v994_v9, %v756_v49  ;;  %v1214_v49 = vld [vmem:[%s2231_s3] sm:$0x3] }
 0x186   :  { %v1077_v58 = vunpack.c.l.b16 %v1026_v19  ;;  %v1244_v51 = vsel %vm1137_vm8, %v1214_v49, 0 }
 0x187   :  { %v1956_v34 = vpop.permute.xlu2 %665  ;;  %1253 = vmatpush.bf16.msra.mxu2 %v1244_v51  ;;  %1405 = vmatpush.bf16.msra.mxu3 %v1244_v51 }
 0x18a   :  { %609 = vrot.lane.b32.xlu0 %v1963_v42, %s1498_s14  ;;  %709 = vrot.lane.b32.xlu1 %v1967_v36, %s1494_s1 }
 0x18c   :  { %v632_v47 = vpop.permute.xlu0 %631  ;;  %v696_v37 = vpop.permute.xlu1 %695 }
 0x18d   :  { %v964_v23 = vsel %vm952_vm12, %v931_v53, %v696_v37  ;;  %741 = vrot.lane.b32.xlu2 %v1888_v1, %s1496_s11  ;;  %v199_v1 = vpop.f32.mrf.mxu3 }
 0x18e   :  { %v996_v31 = vsel %vm984_vm13, %v964_v23, %v728_v44 }
 0x18f   :  { %v602_v41 = vpop.permute.xlu2 %601  ;;  %v1028_v4 = vsel %vm1016_vm14, %v996_v31, %v758_v27  ;;  %v200_v27 = vadd.f32 %v1564_v46, %v199_v1 }
 0x190   :  { %v1078_v52 = vunpack.c.l.b16 %v1028_v4 }
 0x192   :  { %673 = vrot.lane.b32.xlu0 %v1876_v30, %s1499_s15  ;;  %639 = vrot.lane.b32.xlu1 %v1824_v24, %s1497_s4  ;;  %v1091_v48 = vpack.c.b16 %v1078_v52, %v1077_v58  ;;  %v217_v24 = vmax.f32 %v200_v27, 0.0 }
 0x194   :  { %v556_v59 = vpop.permute.xlu0 %555  ;;  %v600_v28 = vpop.permute.xlu1 %599  ;;  %1384 = vmatmul.msk.bf16.gmra.mxu1 %vm1112_vm15, %v1091_v48  ;;  %v233_v46 = vpack.c.bf16 %v217_v24, %v217_v24 }
 0x195   :  { %613 = vrot.lane.b32.xlu2 %v1967_v36, %s1498_s14  ;;  %v839_v44 = vsel %vm823_vm9, %v801_v26, %v556_v59 }
 0x196   :  { %v870_v8 = vsel %vm854_vm10, %v839_v44, %v602_v41 }
 0x197   :  { %v760_v56 = vpop.permute.xlu2 %759 }
 0x19a   :  { %707 = vrot.lane.b32.xlu0 %v1927_v40, %s1494_s1  ;;  %675 = vrot.lane.b32.xlu1 %v491_v11, %s1499_s15 }
 0x19c   :  { %v730_v30 = vpop.permute.xlu0 %729  ;;  %v634_v57 = vpop.permute.xlu1 %633 }
 0x19d   :  { %641 = vrot.lane.b32.xlu2 %v1898_v33, %s1497_s4  ;;  %v902_v54 = vsel %vm128_vm0, %v870_v8, %v634_v57 }
 0x19f   :  { %v1998_v16 = vpop.permute.xlu2 %635 }
 0x1a2   :  { %767 = vrot.lane.b32.xlu0 %v491_v11, %s1495_s10  ;;  %737 = vrot.lane.b32.xlu1 %v1898_v33, %s1496_s11  ;;  %v265_v33 = vunpack.c.l.b16 %v233_v46  ;;  %v837_v11 = vsel %vm823_vm9, %v798_v21, %v1919_v32 }
 0x1a3   :  { %v868_v18 = vsel %vm854_vm10, %v837_v11, %v600_v28 }
 0x1a4   :  { %v668_v62 = vpop.permute.xlu0 %667  ;;  %v2013_v6 = vpop.permute.xlu1 %513  ;;  %v281_v29 = vpack.c.b16 %v265_v33, %v265_v33  ;;  %v900_v60 = vsel %vm128_vm0, %v868_v18, %v632_v47 }
 0x1a5   :  { %v935_v22 = vsel %vm919_vm11, %v902_v54, %v668_v62  ;;  %705 = vrot.lane.b32.xlu2 %v1963_v42, %s1494_s1  ;;  %v933_v53 = vsel %vm919_vm11, %v900_v60, %v1956_v34  ;;  %v804_v18 = vsel %vm777_vm7, %v1802_v63, %v2013_v6 }
 0x1a6   :  { %v968_v55 = vsel %vm952_vm12, %v935_v22, %v1662_v25  ;;  %v388_v23 = vshrl.u32 %v281_v29, 16 }
 0x1a7   :  { %v2023_v61 = vpop.permute.xlu2 %557  ;;  %v1000_v9 = vsel %vm984_vm13, %v968_v55, %v1691_v45 }
 0x1a8   :  { %v1032_v47 = vsel %vm1016_vm14, %v1000_v9, %v1684_v39  ;;  %v390_v58 = vrot.slane %v388_v23, 7  ;;  %v841_v15 = vsel %vm823_vm9, %v804_v18, %v2023_v61 }
 0x1a9   :  { %v1080_v4 = vunpack.c.l.b16 %v1032_v47 }
 0x1aa   :  { %525 = vrot.lane.b32.xlu0 %v1570_v0, %s1493_s0  ;;  %769 = vrot.lane.b32.xlu1 %v1906_v17, %s1495_s10 }
 0x1ac   :  { %v516_v32 = vpop.permute.xlu0 %515  ;;  %v698_v37 = vpop.permute.xlu1 %697 }
 0x1ad   :  { %v966_v19 = vsel %vm952_vm12, %v933_v53, %v698_v37  ;;  %739 = vrot.lane.b32.xlu2 %v1857_v10, %s1496_s11  ;;  %v391_v10 = vshll.u32 %v281_v29, 16  ;;  %v807_v55 = vsel %vm777_vm7, %v1818_v12, %v516_v32 }
 0x1ae   :  { %v998_v31 = vsel %vm984_vm13, %v966_v19, %v730_v30 }
 0x1af   :  { %v734_v0 = vpop.permute.xlu2 %733  ;;  %v1030_v41 = vsel %vm1016_vm14, %v998_v31, %v760_v56  ;;  %v393_v59 = vor.u32 %v391_v10, %v390_v58  ;;  %v459_v8 = vrot.slane %v391_v10, 1 }
 0x1b0   :  { %v1079_v17 = vunpack.c.l.b16 %v1030_v41 }
 0x1b1   :  { %v428_v56 = vsel %vm1572_vm3, 0, %v393_v59  ;;  %v460_v33 = vor.u32 %v459_v8, %v388_v23 }
 0x1b2   :  { %615 = vrot.lane.b32.xlu0 %v1615_v38, %s1498_s14  ;;  %567 = vrot.lane.b32.xlu1 %v1923_v7, %s1491_s30  ;;  %v1092_v34 = vpack.c.b16 %v1080_v4, %v1079_v17  ;;  %v2055_v7 = vld [vmem:[%s2233_s5] ss:$0 sm:$0xff] }
 0x1b3   :  { %v495_v22 = vsel %vm1588_vm6, %v460_v33, 0 }
 0x1b4   :  { %v604_v52 = vpop.permute.xlu0 %603  ;;  %v670_v48 = vpop.permute.xlu1 %669  ;;  %1385 = vmatmul.msk.bf16.gmra.mxu1 %vm1112_vm15, %v1092_v34 }
 0x1b5   :  { %523 = vrot.lane.b32.xlu2 %v1862_v20, %s1493_s0 }
 0x1b7   :  { %v672_v28 = vpop.permute.xlu2 %671 }
 0x1b8   :  { %v1150_v1 = vpop.f32.mrf.mxu1 }
 0x1b9   :  { %v1151_v20 = vadd.f32 %v2055_v7, %v1150_v1 }
 0x1ba   :  { %649 = vrot.lane.b32.xlu0 %v281_v29, %s1497_s4  ;;  %617 = vrot.lane.b32.xlu1 %v428_v56, %s1498_s14 }
 0x1bb   :  { %v1190_v26 = vmax.f32 %v1151_v20, 0.0 }
 0x1bc   :  { %v638_v27 = vpop.permute.xlu0 %637  ;;  %v518_v30 = vpop.permute.xlu1 %517 }
 0x1bd   :  { %569 = vrot.lane.b32.xlu2 %v1608_v35, %s1491_s30  ;;  %v810_v21 = vsel %vm777_vm7, %v1892_v3, %v518_v30  ;;  %v872_v3 = vsel %vm854_vm10, %v1751_v50, %v604_v52 }
 0x1be   :  { %v904_v9 = vsel %vm128_vm0, %v872_v3, %v1998_v16 }
 0x1bf   :  { %v766_v57 = vpop.permute.xlu2 %765  ;;  %v937_v63 = vsel %vm919_vm11, %v904_v9, %v670_v48 }
 0x1c0   :  { %v1152_v24 = vpop.f32.mrf.mxu1 }
 0x1c1   :  { %v1153_v5 = vadd.f32 %v2055_v7, %v1152_v24 }
 0x1c2   :  { %713 = vrot.lane.b32.xlu0 %v428_v56, %s1494_s1  ;;  %681 = vrot.lane.b32.xlu1 %v1608_v35, %s1499_s15 }
 0x1c3   :  { %v1191_v44 = vmax.f32 %v1153_v5, 0.0 }
 0x1c4   :  { %v702_v46 = vpop.permute.xlu0 %701  ;;  %v606_v49 = vpop.permute.xlu1 %605 }
 0x1c5   :  { %v1206_v51 = vpack.c.bf16 %v1191_v44, %v1190_v26  ;;  %647 = vrot.lane.b32.xlu2 %v1586_v14, %s1497_s4  ;;  %v874_v50 = vsel %vm854_vm10, %v841_v15, %v606_v49  ;;  %v970_v12 = vsel %vm952_vm12, %v937_v63, %v702_v46 }
 0x1c6   :  { %v906_v6 = vsel %vm128_vm0, %v874_v50, %v638_v27  ;;  %v1002_v32 = vsel %vm984_vm13, %v970_v12, %v734_v0 }
 0x1c7   :  { %v562_v54 = vpop.permute.xlu2 %561  ;;  %1390 = vmatmul.msk.bf16.vlgmr.msra.gmra.mxu2 %vm777_vm7, %v1206_v51  ;;  %v939_v16 = vsel %vm919_vm11, %v906_v6, %v672_v28 }
 0x1c8   :  { %v2070_v62 = vsel %vm823_vm9, %v810_v21, %v562_v54 }
 0x1ca   :  { %745 = vrot.lane.b32.xlu1 %v281_v29, %s1496_s11 }
 0x1cc   :  { %v736_v35 = vpop.permute.xlu0 %735  ;;  %v764_v11 = vpop.permute.xlu1 %763 }
 0x1cd   :  { %683 = vrot.lane.b32.xlu2 %v495_v22, %s1499_s15  ;;  %v1034_v47 = vsel %vm1016_vm14, %v1002_v32, %v764_v11 }
 0x1ce   :  { %v1081_v4 = vunpack.c.l.b16 %v1034_v47 }
 0x1cf   :  { %v2076_v14 = vpop.permute.xlu2 %607 }
 0x1d4   :  { %v520_v29 = vpop.permute.xlu0 %519  ;;  %v560_v60 = vpop.permute.xlu1 %559 }
 0x1d5   :  { %v2090_v37 = vsel %vm823_vm9, %v807_v55, %v560_v60  ;;  %775 = vrot.lane.b32.xlu2 %v495_v22, %s1495_s10  ;;  %v813_v24 = vsel %vm777_vm7, %v1963_v42, %v520_v29 }
 0x1d7   :  { %v564_v53 = vpop.permute.xlu2 %563 }
 0x1d8   :  { %v847_v8 = vsel %vm823_vm9, %v813_v24, %v564_v53 }
 0x1dc   :  { %v644_v61 = vpop.permute.xlu0 %643  ;;  %v704_v19 = vpop.permute.xlu1 %703 }
 0x1dd   :  { %v972_v23 = vsel %vm952_vm12, %v939_v16, %v704_v19 }
 0x1de   :  { %v1004_v31 = vsel %vm984_vm13, %v972_v23, %v736_v35 }
 0x1df   :  { %v678_v41 = vpop.permute.xlu2 %677  ;;  %v1036_v17 = vsel %vm1016_vm14, %v1004_v31, %v766_v57 }
 0x1e0   :  { %v1082_v58 = vunpack.c.l.b16 %v1036_v17 }
 0x1e2   :  { %v1093_v34 = vpack.c.b16 %v1082_v58, %v1081_v4 }
 0x1e4   :  { %v566_v10 = vpop.permute.xlu0 %565  ;;  %v522_v52 = vpop.permute.xlu1 %521  ;;  %1386 = vmatmul.msk.bf16.gmra.mxu1 %vm1112_vm15, %v1093_v34 }
 0x1e5   :  { %v816_v56 = vsel %vm777_vm7, %v1927_v40, %v522_v52 }
 0x1e6   :  { %v849_v57 = vsel %vm823_vm9, %v816_v56, %v566_v10 }
 0x1e7   :  { %v742_v0 = vpop.permute.xlu2 %741 }
 0x1e9   :  { %v1155_v48 = vpop.f32.mrf.mxu1 }
 0x1ea   :  { %v1156_v27 = vadd.f32 %v2055_v7, %v1155_v48 }
 0x1ec   :  { %v680_v59 = vpop.permute.xlu0 %679  ;;  %v612_v28 = vpop.permute.xlu1 %611  ;;  %v1192_v5 = vmax.f32 %v1156_v27, 0.0 }
 0x1ed   :  { %v880_v51 = vsel %vm854_vm10, %v847_v8, %v612_v28 }
 0x1ee   :  { %v912_v42 = vsel %vm128_vm0, %v880_v51, %v644_v61  ;;  %v876_v61 = vsel %vm854_vm10, %v2090_v37, %v2076_v14 }
 0x1ef   :  { %v614_v1 = vpop.permute.xlu2 %613  ;;  %v945_v18 = vsel %vm919_vm11, %v912_v42, %v678_v41 }
 0x1f0   :  { %v882_v26 = vsel %vm854_vm10, %v849_v57, %v614_v1 }
 0x1f1   :  { %v1157_v30 = vpop.f32.mrf.mxu1 }
 0x1f2   :  { %v1158_v20 = vadd.f32 %v2055_v7, %v1157_v30 }
 0x1f4   :  { %v1193_v44 = vmax.f32 %v1158_v20, 0.0  ;;  %v772_v46 = vpop.permute.xlu0 %771  ;;  %v646_v49 = vpop.permute.xlu1 %645 }
 0x1f5   :  { %v914_v40 = vsel %vm128_vm0, %v882_v26, %v646_v49 }
 0x1f6   :  { %v1207_v21 = vpack.c.bf16 %v1193_v44, %v1192_v5  ;;  %v947_v54 = vsel %vm919_vm11, %v914_v40, %v680_v59 }
 0x1f7   :  { %v980_v33 = vsel %vm952_vm12, %v947_v54, %v1713_v2  ;;  %v642_v35 = vpop.permute.xlu2 %641 }
 0x1f8   :  { %1391 = vmatmul.msk.bf16.gmra.mxu2 %vm777_vm7, %v1207_v21  ;;  %v1012_v11 = vsel %vm984_vm13, %v980_v33, %v1724_v13 }
 0x1f9   :  { %v1044_v29 = vsel %vm1016_vm14, %v1012_v11, %v1746_v43 }
 0x1fa   :  { %v1086_v50 = vunpack.c.l.b16 %v1044_v29 }
 0x1fc   :  { %v610_v22 = vpop.permute.xlu0 %609  ;;  %v710_v3 = vpop.permute.xlu1 %709 }
 0x1fd   :  { %v978_v55 = vsel %vm952_vm12, %v945_v18, %v710_v3  ;;  %v878_v16 = vsel %vm854_vm10, %v2070_v62, %v610_v22 }
 0x1fe   :  { %v1010_v60 = vsel %vm984_vm13, %v978_v55, %v742_v0  ;;  %v910_v17 = vsel %vm128_vm0, %v878_v16, %v642_v35 }
 0x1ff   :  { %v1042_v2 = vsel %vm1016_vm14, %v1010_v60, %v772_v46  ;;  %v706_v15 = vpop.permute.xlu2 %705 }
 0x200   :  { %v1085_v9 = vunpack.c.l.b16 %v1042_v2 }
 0x202   :  { %v1095_v53 = vpack.c.b16 %v1086_v50, %v1085_v9 }
 0x204   :  { %v674_v63 = vpop.permute.xlu0 %673  ;;  %v640_v12 = vpop.permute.xlu1 %639  ;;  %1388 = vmatmul.msk.bf16.vlgmr.msrb.gmra.mxu3 %vm1112_vm15, %v1095_v53 }
 0x205   :  { %v908_v43 = vsel %vm128_vm0, %v876_v61, %v640_v12 }
 0x206   :  { %v941_v23 = vsel %vm919_vm11, %v908_v43, %v674_v63 }
 0x207   :  { %v740_v13 = vpop.permute.xlu2 %739  ;;  %v974_v58 = vsel %vm952_vm12, %v941_v23, %v706_v15 }
 0x20c   :  { %v708_v6 = vpop.permute.xlu0 %707  ;;  %v676_v32 = vpop.permute.xlu1 %675 }
 0x20d   :  { %v943_v4 = vsel %vm919_vm11, %v910_v17, %v676_v32 }
 0x20e   :  { %v976_v37 = vsel %vm952_vm12, %v943_v4, %v708_v6  ;;  %v1422_v4 = vld [vmem:[#allocation2 + $0x8] sm:$0xff] }
 0x20f   :  { %v524_v47 = vpop.permute.xlu2 %523  ;;  %v1008_v1 = vsel %vm984_vm13, %v976_v37, %v740_v13 }
 0x210   :  { %v819_v54 = vsel %vm777_vm7, %v1967_v36, %v524_v47  ;;  %v1421_v47 = vld [vmem:[#allocation2] sm:$0xff] }
 0x211   :  { %v1160_v19 = vpop.f32.mrf.mxu1 }
 0x212   :  { %v1161_v34 = vadd.f32 %v2055_v7, %v1160_v19  ;;  %v2176_v19 = vld [vmem:[%s2234_s6] ss:$0 sm:$0xff]  ;;  %s1500_s6 = smov [#allocation5]  }
 0x213   :  { %s1347_s25 = sshll.u32 %s1500_s6, 4  ;;  %s1348_s25 = int_to_ptr.vmem [resolvable:$true] %s1347_s25 }
 0x214   :  { %v768_v31 = vpop.permute.xlu0 %767  ;;  %v738_v41 = vpop.permute.xlu1 %737  ;;  %v1194_v0 = vmax.f32 %v1161_v34, 0.0 }
 0x215   :  { %v1006_v14 = vsel %vm984_vm13, %v974_v58, %v738_v41 }
 0x216   :  { %v1038_v52 = vsel %vm1016_vm14, %v1006_v14, %v768_v31 }
 0x217   :  { %v1083_v27 = vunpack.c.l.b16 %v1038_v52  ;;  %v570_v30 = vpop.permute.xlu2 %569 }
 0x219   :  { %v1162_v10 = vpop.f32.mrf.mxu1 }
 0x21a   :  { %v1163_v62 = vadd.f32 %v2055_v7, %v1162_v10 }
 0x21c   :  { %v1195_v48 = vmax.f32 %v1163_v62, 0.0  ;;  %v526_v59 = vpop.permute.xlu0 %525  ;;  %v770_v28 = vpop.permute.xlu1 %769 }
 0x21d   :  { %v1040_v56 = vsel %vm1016_vm14, %v1008_v1, %v770_v28  ;;  %v822_v46 = vsel %vm777_vm7, %v1615_v38, %v526_v59  ;;  %v1423_v1 = vld [vmem:[#allocation2 + $0x10] sm:$0xff] }
 0x21e   :  { %v1208_v20 = vpack.c.bf16 %v1195_v48, %v1194_v0  ;;  %v1084_v57 = vunpack.c.l.b16 %v1040_v56  ;;  %v853_v8 = vsel %vm823_vm9, %v822_v46, %v570_v30 }
 0x21f   :  { %v648_v44 = vpop.permute.xlu2 %647 }
 0x220   :  { %1392 = vmatmul.msk.bf16.gmra.mxu2 %vm777_vm7, %v1208_v20  ;;  %v1094_v24 = vpack.c.b16 %v1084_v57, %v1083_v27  ;;  %v1424_v57 = vld [vmem:[#allocation2 + $0x18] sm:$0xff] }
 0x222   :  { %1387 = vmatmul.msk.bf16.gmra.mxu1 %vm1112_vm15, %v1094_v24 }
 0x224   :  { %v616_v5 = vpop.permute.xlu0 %615  ;;  %v568_v26 = vpop.permute.xlu1 %567 }
 0x225   :  { %v851_v35 = vsel %vm823_vm9, %v819_v54, %v568_v26 }
 0x226   :  { %v884_v38 = vsel %vm854_vm10, %v851_v35, %v616_v5 }
 0x227   :  { %v684_v42 = vpop.permute.xlu2 %683  ;;  %v916_v55 = vsel %vm128_vm0, %v884_v38, %v648_v44 }
 0x22c   :  { %v618_v49 = vpop.permute.xlu1 %617  ;;  %v650_v40 = vpop.permute.xlu0 %649 }
 0x22d   :  { %v886_v51 = vsel %vm854_vm10, %v853_v8, %v618_v49  ;;  %v1425_v8 = vld [vmem:[#allocation2 + $0x20] sm:$0xff] }
 0x22e   :  { %v918_v21 = vsel %vm128_vm0, %v886_v51, %v650_v40 }
 0x22f   :  { %v951_v11 = vsel %vm919_vm11, %v918_v21, %v684_v42  ;;  %v776_v12 = vpop.permute.xlu2 %775 }
 0x230   :  { %v983_v3 = vsel %vm952_vm12, %v951_v11, %v1662_v25 }
 0x231   :  { %v1165_v33 = vpop.f32.mrf.mxu1  ;;  %v1015_v2 = vsel %vm984_vm13, %v983_v3, %v1691_v45  ;;  %v1426_v3 = vld [vmem:[#allocation2 + $0x28] sm:$0xff] }
 0x232   :  { %v1166_v18 = vadd.f32 %v2055_v7, %v1165_v33  ;;  %v1047_v25 = vsel %vm1016_vm14, %v1015_v2, %v1684_v39 }
 0x233   :  { %v1088_v43 = vunpack.c.l.b16 %v1047_v25 }
 0x234   :  { %v682_v22 = vpop.permute.xlu1 %681  ;;  %v714_v29 = vpop.permute.xlu0 %713  ;;  %v1196_v9 = vmax.f32 %v1166_v18, 0.0 }
 0x235   :  { %v949_v60 = vsel %vm919_vm11, %v916_v55, %v682_v22 }
 0x236   :  { %v982_v63 = vsel %vm952_vm12, %v949_v60, %v714_v29 }
 0x239   :  { %v1167_v36 = vpop.f32.mrf.mxu1 }
 0x23a   :  { %v1168_v15 = vadd.f32 %v2055_v7, %v1167_v36 }
 0x23c   :  { %v1197_v50 = vmax.f32 %v1168_v15, 0.0  ;;  %v746_v53 = vpop.permute.xlu1 %745 }
 0x23d   :  { %v1014_v13 = vsel %vm984_vm13, %v982_v63, %v746_v53  ;;  %v1427_v63 = vld [vmem:[#allocation2 + $0x30] sm:$0xff] }
 0x23e   :  { %v1209_v6 = vpack.c.bf16 %v1197_v50, %v1196_v9  ;;  %v1046_v32 = vsel %vm1016_vm14, %v1014_v13, %v776_v12 }
 0x23f   :  { %v1087_v61 = vunpack.c.l.b16 %v1046_v32 }
 0x240   :  { %1393 = vmatmul.msk.bf16.gmra.mxu2 %vm777_vm7, %v1209_v6 }
 0x241   :  { %v1096_v45 = vpack.c.b16 %v1088_v43, %v1087_v61  ;;  %v1428_v43 = vld [vmem:[#allocation2 + $0x38] sm:$0xff] }
 0x243   :  { %1389 = vmatmul.msk.bf16.gmra.mxu3 %vm1112_vm15, %v1096_v45 }
 0x24a   :  { %v1255_v16 = vpop.f32.mrf.mxu2 }
 0x24b   :  { %v1256_v39 = vadd.f32 %v2176_v19, %v1255_v16 }
 0x24d   :  { %v1295_v23 = vadd.f32 %v1421_v47, %v1256_v39 }
 0x24f   :  { %v1311_v31 = vmax.f32 %v1295_v23, 0.0 }
 0x251   :  { %1327 = vst.msk [vmem:[#allocation5] sm:$0xff] %vm128_vm0, %v1311_v31 }
 0x252   :  { %v1257_v41 = vpop.f32.mrf.mxu2 }
 0x253   :  { %v1258_v17 = vadd.f32 %v2176_v19, %v1257_v41 }
 0x255   :  { %v1296_v58 = vadd.f32 %v1422_v4, %v1258_v17 }
 0x257   :  { %v1312_v34 = vmax.f32 %v1296_v58, 0.0  ;;  %v1429_v58 = vld [vmem:[#allocation2 + $0x40] sm:$0xff] }
 0x259   :  { %1328 = vst.msk [vmem:[#allocation5 + $0x8] sm:$0xff] %vm128_vm0, %v1312_v34 }
 0x261   :  { %v1170_v14 = vpop.f32.mrf.mxu1 }
 0x262   :  { %v1171_v37 = vadd.f32 %v2055_v7, %v1170_v14 }
 0x264   :  { %v1198_v52 = vmax.f32 %v1171_v37, 0.0 }
 0x269   :  { %v1172_v10 = vpop.f32.mrf.mxu1 }
 0x26a   :  { %v1173_v62 = vadd.f32 %v2055_v7, %v1172_v10 }
 0x26c   :  { %v1199_v0 = vmax.f32 %v1173_v62, 0.0 }
 0x26e   :  { %v1210_v48 = vpack.c.bf16 %v1199_v0, %v1198_v52 }
 0x270   :  { %1394 = vmatmul.msk.bf16.gmra.mxu2 %vm777_vm7, %v1210_v48 }
 0x27b   :  { %v1260_v59 = vpop.f32.mrf.mxu2 }
 0x27c   :  { %v1261_v28 = vadd.f32 %v2176_v19, %v1260_v59  ;;  %v1431_v59 = vld [vmem:[#allocation2 + $0x50] sm:$0xff] }
 0x27e   :  { %v1297_v56 = vadd.f32 %v1423_v1, %v1261_v28 }
 0x280   :  { %v1313_v27 = vmax.f32 %v1297_v56, 0.0 }
 0x282   :  { %1329 = vst.msk [vmem:[#allocation5 + $0x10] sm:$0xff] %vm128_vm0, %v1313_v27 }
 0x283   :  { %v1262_v30 = vpop.f32.mrf.mxu2 }
 0x284   :  { %v1263_v20 = vadd.f32 %v2176_v19, %v1262_v30  ;;  %v1432_v30 = vld [vmem:[#allocation2 + $0x58] sm:$0xff] }
 0x286   :  { %v1298_v24 = vadd.f32 %v1424_v57, %v1263_v20 }
 0x287   :  { %v1180_v51 = vpop.f32.mrf.mxu3 }
 0x288   :  { %v1314_v5 = vmax.f32 %v1298_v24, 0.0  ;;  %v1181_v36 = vadd.f32 %v2055_v7, %v1180_v51 }
 0x28a   :  { %1330 = vst.msk [vmem:[#allocation5 + $0x18] sm:$0xff] %vm128_vm0, %v1314_v5  ;;  %v1202_v15 = vmax.f32 %v1181_v36, 0.0 }
 0x28f   :  { %v1182_v29 = vpop.f32.mrf.mxu3 }
 0x290   :  { %v1183_v60 = vadd.f32 %v2055_v7, %v1182_v29 }
 0x292   :  { %v1203_v2 = vmax.f32 %v1183_v60, 0.0 }
 0x294   :  { %v1212_v9 = vpack.c.bf16 %v1203_v2, %v1202_v15 }
 0x29f   :  { %v1175_v26 = vpop.f32.mrf.mxu1 }
 0x2a0   :  { %v1176_v49 = vadd.f32 %v2055_v7, %v1175_v26  ;;  %v1433_v26 = vld [vmem:[#allocation2 + $0x60] sm:$0xff] }
 0x2a2   :  { %v1200_v35 = vmax.f32 %v1176_v49, 0.0 }
 0x2a3   :  { %v1265_v44 = vpop.f32.mrf.mxu2 }
 0x2a4   :  { %v1266_v46 = vadd.f32 %v2176_v19, %v1265_v44 }
 0x2a6   :  { %v1299_v40 = vadd.f32 %v1425_v8, %v1266_v46 }
 0x2a7   :  { %v1177_v21 = vpop.f32.mrf.mxu1 }
 0x2a8   :  { %v1315_v54 = vmax.f32 %v1299_v40, 0.0  ;;  %v1178_v33 = vadd.f32 %v2055_v7, %v1177_v21  ;;  %v1434_v40 = vld [vmem:[#allocation2 + $0x68] sm:$0xff] }
 0x2aa   :  { %1331 = vst.msk [vmem:[#allocation5 + $0x20] sm:$0xff] %vm128_vm0, %v1315_v54  ;;  %v1201_v42 = vmax.f32 %v1178_v33, 0.0 }
 0x2ab   :  { %v1267_v11 = vpop.f32.mrf.mxu2 }
 0x2ac   :  { %v1211_v22 = vpack.c.bf16 %v1201_v42, %v1200_v35  ;;  %v1268_v38 = vadd.f32 %v2176_v19, %v1267_v11  ;;  %v1435_v35 = vld [vmem:[#allocation2 + $0x70] sm:$0xff] }
 0x2ae   :  { %v1300_v18 = vadd.f32 %v1426_v3, %v1268_v38  ;;  %1395 = vmatmul.msk.bf16.gmra.mxu2 %vm777_vm7, %v1211_v22  ;;  %v1436_v3 = vld [vmem:[#allocation2 + $0x78] sm:$0xff] }
 0x2b0   :  { %v1316_v55 = vmax.f32 %v1300_v18, 0.0 }
 0x2b2   :  { %1332 = vst.msk [vmem:[#allocation5 + $0x28] sm:$0xff] %vm128_vm0, %v1316_v55 }
 0x2be   :  { %1396 = vmatmul.msk.bf16.gmra.mxu2 %vm777_vm7, %v1212_v9 }
 0x2c3   :  { %v1270_v50 = vpop.f32.mrf.mxu2 }
 0x2c4   :  { %v1271_v53 = vadd.f32 %v2176_v19, %v1270_v50 }
 0x2c6   :  { %v1301_v25 = vadd.f32 %v1427_v63, %v1271_v53  ;;  %v1185_v12 = vpop.f32.mrf.mxu3 }
 0x2c7   :  { %v1186_v61 = vadd.f32 %v2055_v7, %v1185_v12 }
 0x2c8   :  { %v1317_v13 = vmax.f32 %v1301_v25, 0.0 }
 0x2c9   :  { %v1204_v23 = vmax.f32 %v1186_v61, 0.0 }
 0x2ca   :  { %1333 = vst.msk [vmem:[#allocation5 + $0x30] sm:$0xff] %vm128_vm0, %v1317_v13 }
 0x2cb   :  { %v1272_v6 = vpop.f32.mrf.mxu2 }
 0x2cc   :  { %v1273_v32 = vadd.f32 %v2176_v19, %v1272_v6 }
 0x2ce   :  { %v1302_v45 = vadd.f32 %v1428_v43, %v1273_v32  ;;  %v1187_v16 = vpop.f32.mrf.mxu3 }
 0x2cf   :  { %v1188_v39 = vadd.f32 %v2055_v7, %v1187_v16  ;;  %v1430_v7 = vld [vmem:[#allocation2 + $0x48] sm:$0xff] }
 0x2d0   :  { %v1318_v47 = vmax.f32 %v1302_v45, 0.0 }
 0x2d1   :  { %v1205_v31 = vmax.f32 %v1188_v39, 0.0 }
 0x2d2   :  { %1334 = vst.msk [vmem:[#allocation5 + $0x38] sm:$0xff] %vm128_vm0, %v1318_v47 }
 0x2d3   :  { %v1213_v41 = vpack.c.bf16 %v1205_v31, %v1204_v23 }
 0x2d5   :  { %1397 = vmatmul.msk.bf16.vlgmr.msra.gmra.mxu3 %vm777_vm7, %v1213_v41 }
 0x2f3   :  { %v1275_v17 = vpop.f32.mrf.mxu2 }
 0x2f4   :  { %v1276_v4 = vadd.f32 %v2176_v19, %v1275_v17 }
 0x2f6   :  { %v1303_v34 = vadd.f32 %v1429_v58, %v1276_v4 }
 0x2f8   :  { %v1319_v14 = vmax.f32 %v1303_v34, 0.0 }
 0x2fa   :  { %1335 = vst.msk [vmem:[#allocation5 + $0x40] sm:$0xff] %vm128_vm0, %v1319_v14 }
 0x2fb   :  { %v1277_v37 = vpop.f32.mrf.mxu2 }
 0x2fc   :  { %v1278_v10 = vadd.f32 %v2176_v19, %v1277_v37 }
 0x2fe   :  { %v1304_v62 = vadd.f32 %v1430_v7, %v1278_v10 }
 0x300   :  { %v1320_v52 = vmax.f32 %v1304_v62, 0.0 }
 0x302   :  { %1336 = vst.msk [vmem:[#allocation5 + $0x48] sm:$0xff] %vm128_vm0, %v1320_v52 }
 0x331   :  { %v1280_v0 = vpop.f32.mrf.mxu2 }
 0x332   :  { %v1281_v48 = vadd.f32 %v2176_v19, %v1280_v0 }
 0x334   :  { %v1305_v28 = vadd.f32 %v1431_v59, %v1281_v48 }
 0x336   :  { %v1321_v1 = vmax.f32 %v1305_v28, 0.0 }
 0x338   :  { %1337 = vst.msk [vmem:[#allocation5 + $0x50] sm:$0xff] %vm128_vm0, %v1321_v1 }
 0x339   :  { %v1282_v56 = vpop.f32.mrf.mxu2 }
 0x33a   :  { %v1283_v27 = vadd.f32 %v2176_v19, %v1282_v56 }
 0x33c   :  { %v1306_v20 = vadd.f32 %v1432_v30, %v1283_v27 }
 0x33e   :  { %v1322_v57 = vmax.f32 %v1306_v20, 0.0 }
 0x340   :  { %1338 = vst.msk [vmem:[#allocation5 + $0x58] sm:$0xff] %vm128_vm0, %v1322_v57 }
 0x341   :  { %v1285_v24 = vpop.f32.mrf.mxu2 }
 0x342   :  { %v1286_v5 = vadd.f32 %v2176_v19, %v1285_v24 }
 0x344   :  { %v1307_v44 = vadd.f32 %v1433_v26, %v1286_v5 }
 0x346   :  { %v1323_v46 = vmax.f32 %v1307_v44, 0.0 }
 0x348   :  { %1339 = vst.msk [vmem:[#allocation5 + $0x60] sm:$0xff] %vm128_vm0, %v1323_v46 }
 0x349   :  { %v1287_v49 = vpop.f32.mrf.mxu2 }
 0x34a   :  { %v1288_v8 = vadd.f32 %v2176_v19, %v1287_v49 }
 0x34c   :  { %v1308_v51 = vadd.f32 %v1434_v40, %v1288_v8 }
 0x34e   :  { %v1324_v21 = vmax.f32 %v1308_v51, 0.0 }
 0x350   :  { %1340 = vst.msk [vmem:[#allocation5 + $0x68] sm:$0xff] %vm128_vm0, %v1324_v21 }
 0x358   :  { %v1290_v54 = vpop.f32.mrf.mxu3 }
 0x359   :  { %v1291_v33 = vadd.f32 %v2176_v19, %v1290_v54 }
 0x35b   :  { %v1309_v42 = vadd.f32 %v1435_v35, %v1291_v33 }
 0x35d   :  { %v1325_v11 = vmax.f32 %v1309_v42, 0.0 }
 0x35f   :  { %1341 = vst.msk [vmem:[#allocation5 + $0x70] sm:$0xff] %vm128_vm0, %v1325_v11 }
 0x360   :  { %v1292_v22 = vpop.f32.mrf.mxu3 }
 0x361   :  { %v1293_v38 = vadd.f32 %v2176_v19, %v1292_v22 }
 0x363   :  { %v1310_v18 = vadd.f32 %v1436_v3, %v1293_v38 }
 0x365   :  { %v1326_v55 = vmax.f32 %v1310_v18, 0.0 }
 0x367   :  { %1342 = vst.msk [vmem:[#allocation5 + $0x78] sm:$0xff] %vm128_vm0, %v1326_v55 }
 0x368   :  { %1355 = dma.vmem_to_hbm [thread:$0]  %s1348_s25, 2048, %s1350_s28, [#allocation4], %s1490_s29, %s1490_s29, %s1491_s30  }
 0x369   :  { %1487 = dma.done.wait [#allocation4], 2048  }
 0x36a   :  { %1488 = vsyncadd [#allocation4], 4294965248 }
 0x36b   :  { %1360 = vsyncpa [#allocation3], 1 }
 0x36c   :  { %1361 = vsyncpa [#allocation4], 1 }

</bundles_post_ra>
